<compile_context>
chip_gen: v7x
topology: tpu7x:2x2x1
jax: 0.10.0
libtpu: 0.0.40
codegen_flags: <defaults>
</compile_context>

<pallas_src>
import functools

import jax
import jax.numpy as jnp
from jax.experimental import pallas as pl
from jax.experimental.pallas import tpu as pltpu

EPS = 1e-12


# ----------------------------------------------------------------------------
# Helpers
# ----------------------------------------------------------------------------
def _vmem_capacity_bytes():
    """Generation-aware VMEM capacity (128 MiB v5e/v6e, 64 MiB per TC on v7x)."""
    try:
        info = pltpu.get_tpu_info()
        cap = getattr(info, "vmem_capacity_bytes", None)
        if cap:
            return int(cap)
    except Exception:
        pass
    return 64 * 1024 * 1024  # conservative default (v7x per-TensorCore VMEM)


def _l2_normalize(x, axis):
    sq = jnp.sum(x * x, axis=axis, keepdims=True)
    return x * jax.lax.rsqrt(jnp.maximum(sq, EPS))


def _choose_batch_tile(batch, bytes_per_row, vmem_budget):
    """Largest batch tile that fits the budget, is a multiple of 8 (or == batch),
    and leaves >= 2 grid steps when the batch is large enough (v7x megacore)."""
    if batch <= 8:
        return batch
    tb = max(8, int(vmem_budget // max(int(bytes_per_row), 1)))
    tb = (tb // 8) * 8
    if batch >= 16:
        half = ((batch // 2) // 8) * 8
        tb = min(tb, max(8, half))      # ensure at least 2 grid steps
    return max(8, min(tb, batch))


# ----------------------------------------------------------------------------
# Fused kernel: mean-pool -> l2-norm -> similarity -> top-k -> gather -> concat
# ----------------------------------------------------------------------------
def _fused_prompt_kernel(x_ref, knt_ref, pool_ref, *rest, top_k, prompt_len,
                         inv_seq_len, has_mask, use_bf16_matmul):
    if has_mask:
        mask_ref = rest[0]
        xnorm_ref, sim_ref, idx_ref, out_ref, bp_ref = rest[1:]
    else:
        mask_ref = None
        xnorm_ref, sim_ref, idx_ref, out_ref, bp_ref = rest

    # ---- query key: mean over seq, l2-normalize (matches torch eps semantics).
    x = x_ref[...]                                              # (TB, L, D)
    x_mean = jnp.sum(x.astype(jnp.float32), axis=1) * inv_seq_len   # (TB, D)
    sq = jnp.sum(x_mean * x_mean, axis=1, keepdims=True)
    xn = x_mean * jax.lax.rsqrt(jnp.maximum(sq, EPS))
    xnorm_ref[...] = xn

    # ---- similarity against pre-transposed normalized keys (no transpose here).
    knt = knt_ref[...]                                          # (D, P)
    if use_bf16_matmul:
        sim = jnp.dot(xn.astype(jnp.bfloat16), knt.astype(jnp.bfloat16),
                      preferred_element_type=jnp.float32)
    else:
        sim = jnp.dot(xn, knt, preferred_element_type=jnp.float32)   # (TB, P)
    sim_ref[...] = sim

    tb, p = sim.shape
    iota_f = jax.lax.broadcasted_iota(jnp.int32, (tb, p), 1).astype(jnp.float32)

    # ---- top-k (or provided mask) as one-hot rows: fully vectorized, no scalars.
    onehots = []
    idx_cols = []
    if has_mask:
        idx_blk = mask_ref[...].astype(jnp.int32)               # (TB, K)
        for k in range(top_k):
            col = idx_blk[:, k:k + 1]                           # (TB, 1)
            onehots.append(iota_f == col.astype(jnp.float32))
            idx_cols.append(col)
    else:
        working = sim
        for k in range(top_k):
            m = jnp.max(working, axis=1, keepdims=True)          # (TB, 1)
            hit = working == m
            pos = jnp.min(jnp.where(hit, iota_f, float(p)),
                          axis=1, keepdims=True)                 # first argmax
            onehot = iota_f == pos                               # (TB, P)
            onehots.append(onehot)
            idx_cols.append(pos.astype(jnp.int32))
            working = jnp.where(onehot, -1e30, working)

    idx_ref[...] = jnp.concatenate(idx_cols, axis=1)

    # ---- gather the selected prompts from the VMEM-resident pool via one-hot
    #      matmuls and write both batched_prompt and the head of prompted_embedding.
    out_dtype = out_ref.dtype
    for k in range(top_k):
        w = onehots[k].astype(jnp.float32)                       # (TB, P)
        for r in range(prompt_len):
            row = jnp.dot(w, pool_ref[:, r, :].astype(jnp.float32),
                          preferred_element_type=jnp.float32)    # (TB, D)
            row = row.astype(out_dtype)
            j = k * prompt_len + r
            out_ref[:, j, :] = row
            bp_ref[:, j, :] = row

    # ---- concat tail: x_embed goes straight after the prompts (single x read).
    out_ref[:, top_k * prompt_len:, :] = x.astype(out_dtype)


# ----------------------------------------------------------------------------
# Forward wrapper mirroring Prompt.forward (prompt_pool path).
# ----------------------------------------------------------------------------
def prompt_forward(x_embed, prompt, prompt_key, top_k, prompt_mask=None,
                   use_bf16_matmul=False):
    """Mirrors Prompt.forward for prompt_pool=True, embedding_key='mean',
    batchwise_prompt=False, text=False."""
    B, L, D = x_embed.shape
    P, Lp, _ = prompt.shape
    Kp = top_k * Lp
    total_len = Kp + L

    # Tiny: plain JAX (XLA fuses), passed pre-transposed to the kernel.
    prompt_norm = _l2_normalize(prompt_key.astype(jnp.float32), axis=1)   # (P, D)
    knt = prompt_norm.T                                                   # (D, P)

    itemsize = jnp.dtype(x_embed.dtype).itemsize
    vmem_cap = _vmem_capacity_bytes()
    # Double-buffered per-batch-row bytes across all batch-tiled inputs/outputs.
    bytes_per_row = 2 * (L * D * itemsize                  # x tile
                         + total_len * D * itemsize        # prompted out
                         + Kp * D * itemsize               # batched_prompt out
                         + D * 4 + P * 4 + top_k * 4)      # xnorm / sim / idx
    resident = 2 * (D * P * 4 + P * Lp * D * itemsize)     # keys + pool
    budget = max(vmem_cap // 3 - resident, 1 << 20)
    TB = _choose_batch_tile(B, bytes_per_row, budget)
    grid = (pl.cdiv(B, TB),)

    has_mask = prompt_mask is not None
    kernel = functools.partial(
        _fused_prompt_kernel, top_k=top_k, prompt_len=Lp, inv_seq_len=1.0 / L,
        has_mask=has_mask, use_bf16_matmul=use_bf16_matmul)

    in_specs = [
        pl.BlockSpec((TB, L, D), lambda i: (i, 0, 0)),       # x, batch tiled
        pl.BlockSpec((D, P), lambda i: (0, 0)),              # normalized keys^T (resident)
        pl.BlockSpec((P, Lp, D), lambda i: (0, 0, 0)),       # prompt pool (resident)
    ]
    args = [x_embed, knt, prompt]
    if has_mask:
        in_specs.append(pl.BlockSpec((TB, top_k), lambda i: (i, 0)))
        args.append(jnp.asarray(prompt_mask).astype(jnp.int32))

    out_shape = (
        jax.ShapeDtypeStruct((B, D), jnp.float32),               # x_embed_norm
        jax.ShapeDtypeStruct((B, P), jnp.float32),               # similarity
        jax.ShapeDtypeStruct((B, top_k), jnp.int32),             # prompt idx
        jax.ShapeDtypeStruct((B, total_len, D), x_embed.dtype),  # prompted_embedding
        jax.ShapeDtypeStruct((B, Kp, D), x_embed.dtype),         # batched_prompt
    )
    out_specs = (
        pl.BlockSpec((TB, D), lambda i: (i, 0)),
        pl.BlockSpec((TB, P), lambda i: (i, 0)),
        pl.BlockSpec((TB, top_k), lambda i: (i, 0)),
        pl.BlockSpec((TB, total_len, D), lambda i: (i, 0, 0)),
        pl.BlockSpec((TB, Kp, D), lambda i: (i, 0, 0)),
    )

    x_embed_norm, similarity, idx, prompted, batched_prompt = pl.pallas_call(
        kernel,
        out_shape=out_shape,
        grid_spec=pltpu.PrefetchScalarGridSpec(
            num_scalar_prefetch=0, grid=grid,
            in_specs=in_specs, out_specs=out_specs),
        compiler_params=pltpu.CompilerParams(
            dimension_semantics=("parallel",),
            vmem_limit_bytes=min(int(0.85 * vmem_cap), 112 * 1024 * 1024)),
    )(*args)

    out = {}
    out['prompt_idx'] = idx
    out['prompt_norm'] = prompt_norm
    out['x_embed_norm'] = x_embed_norm
    out['similarity'] = similarity

    batched_key_norm = prompt_norm[idx]                     # (B, K, D) tiny gather
    out['selected_key'] = batched_key_norm
    sim = batched_key_norm * x_embed_norm[:, None, :]       # (B, K, D) tiny elementwise
    out['sim'] = sim
    out['reduce_sim'] = jnp.sum(sim) / B

    out['total_prompt_len'] = Kp
    out['prompted_embedding'] = prompted
    out['batched_prompt'] = batched_prompt
    return out


# ----------------------------------------------------------------------------
# Pure-JAX reference of the same path (correctness sanity check).
# ----------------------------------------------------------------------------
def _reference_forward(x_embed, prompt, prompt_key, top_k):
    B, _, D = x_embed.shape
    xn = _l2_normalize(jnp.mean(x_embed, axis=1), 1)
    kn = _l2_normalize(prompt_key, 1)
    similarity = xn @ kn.T
    _, idx = jax.lax.top_k(similarity, top_k)
    batched_key_norm = kn[idx]
    sim = batched_key_norm * xn[:, None, :]
    reduce_sim = jnp.sum(sim) / B
    return xn, kn, similarity, sim, reduce_sim, idx


if __name__ == "__main__":
    # Small shapes consistent with the module.
    batch, seq, embed_dim = 2, 8, 32
    pool_size, length, top_k = 8, 5, 4

    key = jax.random.PRNGKey(0)
    k_x, k_prompt, k_key = jax.random.split(key, 3)

    # prompt_init='uniform' -> uniform(-1, 1).
    prompt = jax.random.uniform(k_prompt, (pool_size, length, embed_dim),
                                minval=-1.0, maxval=1.0, dtype=jnp.float32)
    prompt_key_param = jax.random.uniform(k_key, (pool_size, embed_dim),
                                          minval=-1.0, maxval=1.0, dtype=jnp.float32)
    x_embed = jax.random.normal(k_x, (batch, seq, embed_dim), dtype=jnp.float32)

    out = prompt_forward(x_embed, prompt, prompt_key_param, top_k)
    jax.block_until_ready(out['prompted_embedding'])
    jax.block_until_ready(out['reduce_sim'])

    # Sanity checks against a pure-JAX reference.
    ref_xn, ref_kn, ref_sim_mat, ref_sim, ref_reduce_sim, ref_idx = _reference_forward(
        x_embed, prompt, prompt_key_param, top_k)
    assert jnp.allclose(out['x_embed_norm'], ref_xn, atol=1e-4, rtol=1e-4)
    assert jnp.allclose(out['prompt_norm'], ref_kn, atol=1e-4, rtol=1e-4)
    assert jnp.allclose(out['similarity'], ref_sim_mat, atol=1e-3, rtol=1e-3)
    assert jnp.array_equal(out['prompt_idx'], ref_idx)
    assert jnp.allclose(out['sim'], ref_sim, atol=1e-3, rtol=1e-3)
    assert jnp.allclose(out['reduce_sim'], ref_reduce_sim, atol=1e-3, rtol=1e-3)

    # Check the fused gather+concat against an XLA gather/concat with the same idx.
    ref_bp = prompt[out['prompt_idx']].reshape(batch, top_k * length, embed_dim)
    ref_prompted = jnp.concatenate([ref_bp, x_embed], axis=1)
    assert jnp.allclose(out['prompted_embedding'], ref_prompted, atol=1e-5, rtol=1e-5)
    assert jnp.allclose(out['batched_prompt'], ref_bp, atol=1e-5, rtol=1e-5)
    assert out['prompted_embedding'].shape == (batch, top_k * length + seq, embed_dim)
    assert out['batched_prompt'].shape == (batch, top_k * length, embed_dim)
    assert out['total_prompt_len'] == top_k * length

    print("KERNEL_OK")
</pallas_src>

<mosaic_0001>
module attributes {stable_mosaic.version = 11 : i64} {
  func.func @_fused_prompt_kernel(%arg0: i32, %arg1: memref<2x8x32xf32, #tpu.memory_space<vmem>>, %arg2: memref<32x8xf32, #tpu.memory_space<vmem>>, %arg3: memref<8x5x32xf32, #tpu.memory_space<vmem>>, %arg4: memref<2x32xf32, #tpu.memory_space<vmem>>, %arg5: memref<2x8xf32, #tpu.memory_space<vmem>>, %arg6: memref<2x4xi32, #tpu.memory_space<vmem>>, %arg7: memref<2x28x32xf32, #tpu.memory_space<vmem>>, %arg8: memref<2x20x32xf32, #tpu.memory_space<vmem>>) attributes {dimension_semantics = [#tpu.dimension_semantics<parallel>], iteration_bounds = array<i64: 1>, scalar_prefetch = 0 : i64, scratch_operands = 0 : i64, tpu.core_type = #tpu.core_type<tc>, window_params = [{transform_indices = @transform_0, window_bounds = array<i64: 2, 8, 32>}, {pipeline_mode = #tpu.pipeline_mode<synchronous>, transform_indices = @transform_1, window_bounds = array<i64: 32, 8>}, {pipeline_mode = #tpu.pipeline_mode<synchronous>, transform_indices = @transform_2, window_bounds = array<i64: 8, 5, 32>}, {transform_indices = @transform_3, window_bounds = array<i64: 2, 32>}, {transform_indices = @transform_4, window_bounds = array<i64: 2, 8>}, {transform_indices = @transform_5, window_bounds = array<i64: 2, 4>}, {transform_indices = @transform_6, window_bounds = array<i64: 2, 28, 32>}, {transform_indices = @transform_7, window_bounds = array<i64: 2, 20, 32>}]} {
    %c0 = arith.constant 0 : index
    %c0_0 = arith.constant 0 : index
    %c0_1 = arith.constant 0 : index
    %0 = vector.load %arg1[%c0, %c0_0, %c0_1] : memref<2x8x32xf32, #tpu.memory_space<vmem>>, vector<2x8x32xf32>
    %cst = arith.constant dense<0.000000e+00> : vector<2x32xf32>
    %1 = vector.multi_reduction <add>, %0, %cst [1] : vector<2x8x32xf32> to vector<2x32xf32>
    %cst_2 = arith.constant 1.250000e-01 : f32
    %2 = vector.broadcast %cst_2 : f32 to vector<2x32xf32>
    %3 = arith.mulf %1, %2 : vector<2x32xf32>
    %4 = arith.mulf %3, %3 : vector<2x32xf32>
    %cst_3 = arith.constant dense<0.000000e+00> : vector<2xf32>
    %5 = vector.multi_reduction <add>, %4, %cst_3 [1] : vector<2x32xf32> to vector<2xf32>
    %6 = vector.shape_cast %5 : vector<2xf32> to vector<2x1xf32>
    %cst_4 = arith.constant 9.99999996E-13 : f32
    %7 = vector.broadcast %cst_4 : f32 to vector<2x1xf32>
    %8 = arith.maximumf %6, %7 : vector<2x1xf32>
    %9 = math.rsqrt %8 : vector<2x1xf32>
    %10 = vector.broadcast %9 : vector<2x1xf32> to vector<2x32xf32>
    %11 = arith.mulf %3, %10 : vector<2x32xf32>
    %c0_5 = arith.constant 0 : index
    %c0_6 = arith.constant 0 : index
    %12 = vector.load %arg4[%c0_5, %c0_6] : memref<2x32xf32, #tpu.memory_space<vmem>>, vector<2x32xf32>
    tpu.vector_store %arg4[%c0_5, %c0_6], %11 {strides = array<i32>} : memref<2x32xf32, #tpu.memory_space<vmem>>, vector<2x32xf32>,
    %c0_7 = arith.constant 0 : index
    %c0_8 = arith.constant 0 : index
    %13 = vector.load %arg2[%c0_7, %c0_8] : memref<32x8xf32, #tpu.memory_space<vmem>>, vector<32x8xf32>
    %cst_9 = arith.constant dense<0.000000e+00> : vector<2x8xf32>
    %14 = tpu.matmul %11, %13, %cst_9 {dimension_numbers = #tpu.dot_dimension_numbers<[1], [0], [0], [1], [0, 0, 1, 1], [], []>} : vector<2x32xf32>, vector<32x8xf32>, vector<2x8xf32> -> vector<2x8xf32>
    %c0_10 = arith.constant 0 : index
    %c0_11 = arith.constant 0 : index
    %15 = vector.load %arg5[%c0_10, %c0_11] : memref<2x8xf32, #tpu.memory_space<vmem>>, vector<2x8xf32>
    tpu.vector_store %arg5[%c0_10, %c0_11], %14 {strides = array<i32>} : memref<2x8xf32, #tpu.memory_space<vmem>>, vector<2x8xf32>,
    %16 = tpu.iota {dimensions = array<i32: 1>} : vector<2x8xi32>
    %17 = arith.sitofp %16 : vector<2x8xi32> to vector<2x8xf32>
    %cst_12 = arith.constant dense<0xFF800000> : vector<2xf32>
    %18 = vector.multi_reduction <maximumf>, %14, %cst_12 [1] : vector<2x8xf32> to vector<2xf32>
    %19 = vector.shape_cast %18 : vector<2xf32> to vector<2x1xf32>
    %20 = vector.broadcast %19 : vector<2x1xf32> to vector<2x8xf32>
    %21 = arith.cmpf oeq, %14, %20 : vector<2x8xf32>
    %cst_13 = arith.constant 8.000000e+00 : f32
    %22 = vector.broadcast %cst_13 : f32 to vector<2x8xf32>
    %23 = arith.select %21, %17, %22 : vector<2x8xi1>, vector<2x8xf32>
    %cst_14 = arith.constant dense<0x7F800000> : vector<2xf32>
    %24 = vector.multi_reduction <minimumf>, %23, %cst_14 [1] : vector<2x8xf32> to vector<2xf32>
    %25 = vector.shape_cast %24 : vector<2xf32> to vector<2x1xf32>
    %26 = vector.broadcast %25 : vector<2x1xf32> to vector<2x8xf32>
    %27 = arith.cmpf oeq, %17, %26 : vector<2x8xf32>
    %28 = arith.fptosi %25 : vector<2x1xf32> to vector<2x1xi32>
    %cst_15 = arith.constant -1.000000e+30 : f32
    %29 = vector.broadcast %cst_15 : f32 to vector<2x8xf32>
    %30 = arith.select %27, %29, %14 : vector<2x8xi1>, vector<2x8xf32>
    %cst_16 = arith.constant dense<0xFF800000> : vector<2xf32>
    %31 = vector.multi_reduction <maximumf>, %30, %cst_16 [1] : vector<2x8xf32> to vector<2xf32>
    %32 = vector.shape_cast %31 : vector<2xf32> to vector<2x1xf32>
    %33 = vector.broadcast %32 : vector<2x1xf32> to vector<2x8xf32>
    %34 = arith.cmpf oeq, %30, %33 : vector<2x8xf32>
    %cst_17 = arith.constant 8.000000e+00 : f32
    %35 = vector.broadcast %cst_17 : f32 to vector<2x8xf32>
    %36 = arith.select %34, %17, %35 : vector<2x8xi1>, vector<2x8xf32>
    %cst_18 = arith.constant dense<0x7F800000> : vector<2xf32>
    %37 = vector.multi_reduction <minimumf>, %36, %cst_18 [1] : vector<2x8xf32> to vector<2xf32>
    %38 = vector.shape_cast %37 : vector<2xf32> to vector<2x1xf32>
    %39 = vector.broadcast %38 : vector<2x1xf32> to vector<2x8xf32>
    %40 = arith.cmpf oeq, %17, %39 : vector<2x8xf32>
    %41 = arith.fptosi %38 : vector<2x1xf32> to vector<2x1xi32>
    %cst_19 = arith.constant -1.000000e+30 : f32
    %42 = vector.broadcast %cst_19 : f32 to vector<2x8xf32>
    %43 = arith.select %40, %42, %30 : vector<2x8xi1>, vector<2x8xf32>
    %cst_20 = arith.constant dense<0xFF800000> : vector<2xf32>
    %44 = vector.multi_reduction <maximumf>, %43, %cst_20 [1] : vector<2x8xf32> to vector<2xf32>
    %45 = vector.shape_cast %44 : vector<2xf32> to vector<2x1xf32>
    %46 = vector.broadcast %45 : vector<2x1xf32> to vector<2x8xf32>
    %47 = arith.cmpf oeq, %43, %46 : vector<2x8xf32>
    %cst_21 = arith.constant 8.000000e+00 : f32
    %48 = vector.broadcast %cst_21 : f32 to vector<2x8xf32>
    %49 = arith.select %47, %17, %48 : vector<2x8xi1>, vector<2x8xf32>
    %cst_22 = arith.constant dense<0x7F800000> : vector<2xf32>
    %50 = vector.multi_reduction <minimumf>, %49, %cst_22 [1] : vector<2x8xf32> to vector<2xf32>
    %51 = vector.shape_cast %50 : vector<2xf32> to vector<2x1xf32>
    %52 = vector.broadcast %51 : vector<2x1xf32> to vector<2x8xf32>
    %53 = arith.cmpf oeq, %17, %52 : vector<2x8xf32>
    %54 = arith.fptosi %51 : vector<2x1xf32> to vector<2x1xi32>
    %cst_23 = arith.constant -1.000000e+30 : f32
    %55 = vector.broadcast %cst_23 : f32 to vector<2x8xf32>
    %56 = arith.select %53, %55, %43 : vector<2x8xi1>, vector<2x8xf32>
    %cst_24 = arith.constant dense<0xFF800000> : vector<2xf32>
    %57 = vector.multi_reduction <maximumf>, %56, %cst_24 [1] : vector<2x8xf32> to vector<2xf32>
    %58 = vector.shape_cast %57 : vector<2xf32> to vector<2x1xf32>
    %59 = vector.broadcast %58 : vector<2x1xf32> to vector<2x8xf32>
    %60 = arith.cmpf oeq, %56, %59 : vector<2x8xf32>
    %cst_25 = arith.constant 8.000000e+00 : f32
    %61 = vector.broadcast %cst_25 : f32 to vector<2x8xf32>
    %62 = arith.select %60, %17, %61 : vector<2x8xi1>, vector<2x8xf32>
    %cst_26 = arith.constant dense<0x7F800000> : vector<2xf32>
    %63 = vector.multi_reduction <minimumf>, %62, %cst_26 [1] : vector<2x8xf32> to vector<2xf32>
    %64 = vector.shape_cast %63 : vector<2xf32> to vector<2x1xf32>
    %65 = vector.broadcast %64 : vector<2x1xf32> to vector<2x8xf32>
    %66 = arith.cmpf oeq, %17, %65 : vector<2x8xf32>
    %67 = arith.fptosi %64 : vector<2x1xf32> to vector<2x1xi32>
    %68 = tpu.concatenate %28, %41, %54, %67 in 1 : vector<2x1xi32>, vector<2x1xi32>, vector<2x1xi32>, vector<2x1xi32> -> vector<2x4xi32>
    %c0_27 = arith.constant 0 : index
    %c0_28 = arith.constant 0 : index
    %69 = vector.load %arg6[%c0_27, %c0_28] : memref<2x4xi32, #tpu.memory_space<vmem>>, vector<2x4xi32>
    tpu.vector_store %arg6[%c0_27, %c0_28], %68 {strides = array<i32>} : memref<2x4xi32, #tpu.memory_space<vmem>>, vector<2x4xi32>,
    %70 = arith.extui %27 : vector<2x8xi1> to vector<2x8xi32>
    %71 = arith.sitofp %70 : vector<2x8xi32> to vector<2x8xf32>
    %c0_29 = arith.constant 0 : index
    %c0_30 = arith.constant 0 : index
    %c0_31 = arith.constant 0 : index
    %72 = vector.load %arg3[%c0_29, %c0_30, %c0_31] : memref<8x5x32xf32, #tpu.memory_space<vmem>>, vector<8x1x32xf32>
    %73 = vector.shape_cast %72 : vector<8x1x32xf32> to vector<8x32xf32>
    %cst_32 = arith.constant dense<0.000000e+00> : vector<2x32xf32>
    %74 = tpu.matmul %71, %73, %cst_32 {dimension_numbers = #tpu.dot_dimension_numbers<[1], [0], [0], [1], [0, 0, 1, 1], [], []>} : vector<2x8xf32>, vector<8x32xf32>, vector<2x32xf32> -> vector<2x32xf32>
    %c0_33 = arith.constant 0 : index
    %c0_34 = arith.constant 0 : index
    %c0_35 = arith.constant 0 : index
    %75 = vector.load %arg7[%c0_33, %c0_34, %c0_35] : memref<2x28x32xf32, #tpu.memory_space<vmem>>, vector<2x1x32xf32>
    %76 = vector.shape_cast %75 : vector<2x1x32xf32> to vector<2x32xf32>
    %77 = vector.shape_cast %74 : vector<2x32xf32> to vector<2x1x32xf32>
    tpu.vector_store %arg7[%c0_33, %c0_34, %c0_35], %77 {strides = array<i32>} : memref<2x28x32xf32, #tpu.memory_space<vmem>>, vector<2x1x32xf32>,
    %c0_36 = arith.constant 0 : index
    %c0_37 = arith.constant 0 : index
    %c0_38 = arith.constant 0 : index
    %78 = vector.load %arg8[%c0_36, %c0_37, %c0_38] : memref<2x20x32xf32, #tpu.memory_space<vmem>>, vector<2x1x32xf32>
    %79 = vector.shape_cast %78 : vector<2x1x32xf32> to vector<2x32xf32>
    %80 = vector.shape_cast %74 : vector<2x32xf32> to vector<2x1x32xf32>
    tpu.vector_store %arg8[%c0_36, %c0_37, %c0_38], %80 {strides = array<i32>} : memref<2x20x32xf32, #tpu.memory_space<vmem>>, vector<2x1x32xf32>,
    %c0_39 = arith.constant 0 : index
    %c1 = arith.constant 1 : index
    %c0_40 = arith.constant 0 : index
    %81 = vector.load %arg3[%c0_39, %c1, %c0_40] : memref<8x5x32xf32, #tpu.memory_space<vmem>>, vector<8x1x32xf32>
    %82 = vector.shape_cast %81 : vector<8x1x32xf32> to vector<8x32xf32>
    %cst_41 = arith.constant dense<0.000000e+00> : vector<2x32xf32>
    %83 = tpu.matmul %71, %82, %cst_41 {dimension_numbers = #tpu.dot_dimension_numbers<[1], [0], [0], [1], [0, 0, 1, 1], [], []>} : vector<2x8xf32>, vector<8x32xf32>, vector<2x32xf32> -> vector<2x32xf32>
    %c0_42 = arith.constant 0 : index
    %c1_43 = arith.constant 1 : index
    %c0_44 = arith.constant 0 : index
    %84 = vector.load %arg7[%c0_42, %c1_43, %c0_44] : memref<2x28x32xf32, #tpu.memory_space<vmem>>, vector<2x1x32xf32>
    %85 = vector.shape_cast %84 : vector<2x1x32xf32> to vector<2x32xf32>
    %86 = vector.shape_cast %83 : vector<2x32xf32> to vector<2x1x32xf32>
    tpu.vector_store %arg7[%c0_42, %c1_43, %c0_44], %86 {strides = array<i32>} : memref<2x28x32xf32, #tpu.memory_space<vmem>>, vector<2x1x32xf32>,
    %c0_45 = arith.constant 0 : index
    %c1_46 = arith.constant 1 : index
    %c0_47 = arith.constant 0 : index
    %87 = vector.load %arg8[%c0_45, %c1_46, %c0_47] : memref<2x20x32xf32, #tpu.memory_space<vmem>>, vector<2x1x32xf32>
    %88 = vector.shape_cast %87 : vector<2x1x32xf32> to vector<2x32xf32>
    %89 = vector.shape_cast %83 : vector<2x32xf32> to vector<2x1x32xf32>
    tpu.vector_store %arg8[%c0_45, %c1_46, %c0_47], %89 {strides = array<i32>} : memref<2x20x32xf32, #tpu.memory_space<vmem>>, vector<2x1x32xf32>,
    %c0_48 = arith.constant 0 : index
    %c2 = arith.constant 2 : index
    %c0_49 = arith.constant 0 : index
    %90 = vector.load %arg3[%c0_48, %c2, %c0_49] : memref<8x5x32xf32, #tpu.memory_space<vmem>>, vector<8x1x32xf32>
    %91 = vector.shape_cast %90 : vector<8x1x32xf32> to vector<8x32xf32>
    %cst_50 = arith.constant dense<0.000000e+00> : vector<2x32xf32>
    %92 = tpu.matmul %71, %91, %cst_50 {dimension_numbers = #tpu.dot_dimension_numbers<[1], [0], [0], [1], [0, 0, 1, 1], [], []>} : vector<2x8xf32>, vector<8x32xf32>, vector<2x32xf32> -> vector<2x32xf32>
    %c0_51 = arith.constant 0 : index
    %c2_52 = arith.constant 2 : index
    %c0_53 = arith.constant 0 : index
    %93 = vector.load %arg7[%c0_51, %c2_52, %c0_53] : memref<2x28x32xf32, #tpu.memory_space<vmem>>, vector<2x1x32xf32>
    %94 = vector.shape_cast %93 : vector<2x1x32xf32> to vector<2x32xf32>
    %95 = vector.shape_cast %92 : vector<2x32xf32> to vector<2x1x32xf32>
    tpu.vector_store %arg7[%c0_51, %c2_52, %c0_53], %95 {strides = array<i32>} : memref<2x28x32xf32, #tpu.memory_space<vmem>>, vector<2x1x32xf32>,
    %c0_54 = arith.constant 0 : index
    %c2_55 = arith.constant 2 : index
    %c0_56 = arith.constant 0 : index
    %96 = vector.load %arg8[%c0_54, %c2_55, %c0_56] : memref<2x20x32xf32, #tpu.memory_space<vmem>>, vector<2x1x32xf32>
    %97 = vector.shape_cast %96 : vector<2x1x32xf32> to vector<2x32xf32>
    %98 = vector.shape_cast %92 : vector<2x32xf32> to vector<2x1x32xf32>
    tpu.vector_store %arg8[%c0_54, %c2_55, %c0_56], %98 {strides = array<i32>} : memref<2x20x32xf32, #tpu.memory_space<vmem>>, vector<2x1x32xf32>,
    %c0_57 = arith.constant 0 : index
    %c3 = arith.constant 3 : index
    %c0_58 = arith.constant 0 : index
    %99 = vector.load %arg3[%c0_57, %c3, %c0_58] : memref<8x5x32xf32, #tpu.memory_space<vmem>>, vector<8x1x32xf32>
    %100 = vector.shape_cast %99 : vector<8x1x32xf32> to vector<8x32xf32>
    %cst_59 = arith.constant dense<0.000000e+00> : vector<2x32xf32>
    %101 = tpu.matmul %71, %100, %cst_59 {dimension_numbers = #tpu.dot_dimension_numbers<[1], [0], [0], [1], [0, 0, 1, 1], [], []>} : vector<2x8xf32>, vector<8x32xf32>, vector<2x32xf32> -> vector<2x32xf32>
    %c0_60 = arith.constant 0 : index
    %c3_61 = arith.constant 3 : index
    %c0_62 = arith.constant 0 : index
    %102 = vector.load %arg7[%c0_60, %c3_61, %c0_62] : memref<2x28x32xf32, #tpu.memory_space<vmem>>, vector<2x1x32xf32>
    %103 = vector.shape_cast %102 : vector<2x1x32xf32> to vector<2x32xf32>
    %104 = vector.shape_cast %101 : vector<2x32xf32> to vector<2x1x32xf32>
    tpu.vector_store %arg7[%c0_60, %c3_61, %c0_62], %104 {strides = array<i32>} : memref<2x28x32xf32, #tpu.memory_space<vmem>>, vector<2x1x32xf32>,
    %c0_63 = arith.constant 0 : index
    %c3_64 = arith.constant 3 : index
    %c0_65 = arith.constant 0 : index
    %105 = vector.load %arg8[%c0_63, %c3_64, %c0_65] : memref<2x20x32xf32, #tpu.memory_space<vmem>>, vector<2x1x32xf32>
    %106 = vector.shape_cast %105 : vector<2x1x32xf32> to vector<2x32xf32>
    %107 = vector.shape_cast %101 : vector<2x32xf32> to vector<2x1x32xf32>
    tpu.vector_store %arg8[%c0_63, %c3_64, %c0_65], %107 {strides = array<i32>} : memref<2x20x32xf32, #tpu.memory_space<vmem>>, vector<2x1x32xf32>,
    %c0_66 = arith.constant 0 : index
    %c4 = arith.constant 4 : index
    %c0_67 = arith.constant 0 : index
    %108 = vector.load %arg3[%c0_66, %c4, %c0_67] : memref<8x5x32xf32, #tpu.memory_space<vmem>>, vector<8x1x32xf32>
    %109 = vector.shape_cast %108 : vector<8x1x32xf32> to vector<8x32xf32>
    %cst_68 = arith.constant dense<0.000000e+00> : vector<2x32xf32>
    %110 = tpu.matmul %71, %109, %cst_68 {dimension_numbers = #tpu.dot_dimension_numbers<[1], [0], [0], [1], [0, 0, 1, 1], [], []>} : vector<2x8xf32>, vector<8x32xf32>, vector<2x32xf32> -> vector<2x32xf32>
    %c0_69 = arith.constant 0 : index
    %c4_70 = arith.constant 4 : index
    %c0_71 = arith.constant 0 : index
    %111 = vector.load %arg7[%c0_69, %c4_70, %c0_71] : memref<2x28x32xf32, #tpu.memory_space<vmem>>, vector<2x1x32xf32>
    %112 = vector.shape_cast %111 : vector<2x1x32xf32> to vector<2x32xf32>
    %113 = vector.shape_cast %110 : vector<2x32xf32> to vector<2x1x32xf32>
    tpu.vector_store %arg7[%c0_69, %c4_70, %c0_71], %113 {strides = array<i32>} : memref<2x28x32xf32, #tpu.memory_space<vmem>>, vector<2x1x32xf32>,
    %c0_72 = arith.constant 0 : index
    %c4_73 = arith.constant 4 : index
    %c0_74 = arith.constant 0 : index
    %114 = vector.load %arg8[%c0_72, %c4_73, %c0_74] : memref<2x20x32xf32, #tpu.memory_space<vmem>>, vector<2x1x32xf32>
    %115 = vector.shape_cast %114 : vector<2x1x32xf32> to vector<2x32xf32>
    %116 = vector.shape_cast %110 : vector<2x32xf32> to vector<2x1x32xf32>
    tpu.vector_store %arg8[%c0_72, %c4_73, %c0_74], %116 {strides = array<i32>} : memref<2x20x32xf32, #tpu.memory_space<vmem>>, vector<2x1x32xf32>,
    %117 = arith.extui %40 : vector<2x8xi1> to vector<2x8xi32>
    %118 = arith.sitofp %117 : vector<2x8xi32> to vector<2x8xf32>
    %c0_75 = arith.constant 0 : index
    %c0_76 = arith.constant 0 : index
    %c0_77 = arith.constant 0 : index
    %119 = vector.load %arg3[%c0_75, %c0_76, %c0_77] : memref<8x5x32xf32, #tpu.memory_space<vmem>>, vector<8x1x32xf32>
    %120 = vector.shape_cast %119 : vector<8x1x32xf32> to vector<8x32xf32>
    %cst_78 = arith.constant dense<0.000000e+00> : vector<2x32xf32>
    %121 = tpu.matmul %118, %120, %cst_78 {dimension_numbers = #tpu.dot_dimension_numbers<[1], [0], [0], [1], [0, 0, 1, 1], [], []>} : vector<2x8xf32>, vector<8x32xf32>, vector<2x32xf32> -> vector<2x32xf32>
    %c0_79 = arith.constant 0 : index
    %c5 = arith.constant 5 : index
    %c0_80 = arith.constant 0 : index
    %122 = vector.load %arg7[%c0_79, %c5, %c0_80] : memref<2x28x32xf32, #tpu.memory_space<vmem>>, vector<2x1x32xf32>
    %123 = vector.shape_cast %122 : vector<2x1x32xf32> to vector<2x32xf32>
    %124 = vector.shape_cast %121 : vector<2x32xf32> to vector<2x1x32xf32>
    tpu.vector_store %arg7[%c0_79, %c5, %c0_80], %124 {strides = array<i32>} : memref<2x28x32xf32, #tpu.memory_space<vmem>>, vector<2x1x32xf32>,
    %c0_81 = arith.constant 0 : index
    %c5_82 = arith.constant 5 : index
    %c0_83 = arith.constant 0 : index
    %125 = vector.load %arg8[%c0_81, %c5_82, %c0_83] : memref<2x20x32xf32, #tpu.memory_space<vmem>>, vector<2x1x32xf32>
    %126 = vector.shape_cast %125 : vector<2x1x32xf32> to vector<2x32xf32>
    %127 = vector.shape_cast %121 : vector<2x32xf32> to vector<2x1x32xf32>
    tpu.vector_store %arg8[%c0_81, %c5_82, %c0_83], %127 {strides = array<i32>} : memref<2x20x32xf32, #tpu.memory_space<vmem>>, vector<2x1x32xf32>,
    %c0_84 = arith.constant 0 : index
    %c1_85 = arith.constant 1 : index
    %c0_86 = arith.constant 0 : index
    %128 = vector.load %arg3[%c0_84, %c1_85, %c0_86] : memref<8x5x32xf32, #tpu.memory_space<vmem>>, vector<8x1x32xf32>
    %129 = vector.shape_cast %128 : vector<8x1x32xf32> to vector<8x32xf32>
    %cst_87 = arith.constant dense<0.000000e+00> : vector<2x32xf32>
    %130 = tpu.matmul %118, %129, %cst_87 {dimension_numbers = #tpu.dot_dimension_numbers<[1], [0], [0], [1], [0, 0, 1, 1], [], []>} : vector<2x8xf32>, vector<8x32xf32>, vector<2x32xf32> -> vector<2x32xf32>
    %c0_88 = arith.constant 0 : index
    %c6 = arith.constant 6 : index
    %c0_89 = arith.constant 0 : index
    %131 = vector.load %arg7[%c0_88, %c6, %c0_89] : memref<2x28x32xf32, #tpu.memory_space<vmem>>, vector<2x1x32xf32>
    %132 = vector.shape_cast %131 : vector<2x1x32xf32> to vector<2x32xf32>
    %133 = vector.shape_cast %130 : vector<2x32xf32> to vector<2x1x32xf32>
    tpu.vector_store %arg7[%c0_88, %c6, %c0_89], %133 {strides = array<i32>} : memref<2x28x32xf32, #tpu.memory_space<vmem>>, vector<2x1x32xf32>,
    %c0_90 = arith.constant 0 : index
    %c6_91 = arith.constant 6 : index
    %c0_92 = arith.constant 0 : index
    %134 = vector.load %arg8[%c0_90, %c6_91, %c0_92] : memref<2x20x32xf32, #tpu.memory_space<vmem>>, vector<2x1x32xf32>
    %135 = vector.shape_cast %134 : vector<2x1x32xf32> to vector<2x32xf32>
    %136 = vector.shape_cast %130 : vector<2x32xf32> to vector<2x1x32xf32>
    tpu.vector_store %arg8[%c0_90, %c6_91, %c0_92], %136 {strides = array<i32>} : memref<2x20x32xf32, #tpu.memory_space<vmem>>, vector<2x1x32xf32>,
    %c0_93 = arith.constant 0 : index
    %c2_94 = arith.constant 2 : index
    %c0_95 = arith.constant 0 : index
    %137 = vector.load %arg3[%c0_93, %c2_94, %c0_95] : memref<8x5x32xf32, #tpu.memory_space<vmem>>, vector<8x1x32xf32>
    %138 = vector.shape_cast %137 : vector<8x1x32xf32> to vector<8x32xf32>
    %cst_96 = arith.constant dense<0.000000e+00> : vector<2x32xf32>
    %139 = tpu.matmul %118, %138, %cst_96 {dimension_numbers = #tpu.dot_dimension_numbers<[1], [0], [0], [1], [0, 0, 1, 1], [], []>} : vector<2x8xf32>, vector<8x32xf32>, vector<2x32xf32> -> vector<2x32xf32>
    %c0_97 = arith.constant 0 : index
    %c7 = arith.constant 7 : index
    %c0_98 = arith.constant 0 : index
    %140 = vector.load %arg7[%c0_97, %c7, %c0_98] : memref<2x28x32xf32, #tpu.memory_space<vmem>>, vector<2x1x32xf32>
    %141 = vector.shape_cast %140 : vector<2x1x32xf32> to vector<2x32xf32>
    %142 = vector.shape_cast %139 : vector<2x32xf32> to vector<2x1x32xf32>
    tpu.vector_store %arg7[%c0_97, %c7, %c0_98], %142 {strides = array<i32>} : memref<2x28x32xf32, #tpu.memory_space<vmem>>, vector<2x1x32xf32>,
    %c0_99 = arith.constant 0 : index
    %c7_100 = arith.constant 7 : index
    %c0_101 = arith.constant 0 : index
    %143 = vector.load %arg8[%c0_99, %c7_100, %c0_101] : memref<2x20x32xf32, #tpu.memory_space<vmem>>, vector<2x1x32xf32>
    %144 = vector.shape_cast %143 : vector<2x1x32xf32> to vector<2x32xf32>
    %145 = vector.shape_cast %139 : vector<2x32xf32> to vector<2x1x32xf32>
    tpu.vector_store %arg8[%c0_99, %c7_100, %c0_101], %145 {strides = array<i32>} : memref<2x20x32xf32, #tpu.memory_space<vmem>>, vector<2x1x32xf32>,
    %c0_102 = arith.constant 0 : index
    %c3_103 = arith.constant 3 : index
    %c0_104 = arith.constant 0 : index
    %146 = vector.load %arg3[%c0_102, %c3_103, %c0_104] : memref<8x5x32xf32, #tpu.memory_space<vmem>>, vector<8x1x32xf32>
    %147 = vector.shape_cast %146 : vector<8x1x32xf32> to vector<8x32xf32>
    %cst_105 = arith.constant dense<0.000000e+00> : vector<2x32xf32>
    %148 = tpu.matmul %118, %147, %cst_105 {dimension_numbers = #tpu.dot_dimension_numbers<[1], [0], [0], [1], [0, 0, 1, 1], [], []>} : vector<2x8xf32>, vector<8x32xf32>, vector<2x32xf32> -> vector<2x32xf32>
    %c0_106 = arith.constant 0 : index
    %c8 = arith.constant 8 : index
    %c0_107 = arith.constant 0 : index
    %149 = vector.load %arg7[%c0_106, %c8, %c0_107] : memref<2x28x32xf32, #tpu.memory_space<vmem>>, vector<2x1x32xf32>
    %150 = vector.shape_cast %149 : vector<2x1x32xf32> to vector<2x32xf32>
    %151 = vector.shape_cast %148 : vector<2x32xf32> to vector<2x1x32xf32>
    tpu.vector_store %arg7[%c0_106, %c8, %c0_107], %151 {strides = array<i32>} : memref<2x28x32xf32, #tpu.memory_space<vmem>>, vector<2x1x32xf32>,
    %c0_108 = arith.constant 0 : index
    %c8_109 = arith.constant 8 : index
    %c0_110 = arith.constant 0 : index
    %152 = vector.load %arg8[%c0_108, %c8_109, %c0_110] : memref<2x20x32xf32, #tpu.memory_space<vmem>>, vector<2x1x32xf32>
    %153 = vector.shape_cast %152 : vector<2x1x32xf32> to vector<2x32xf32>
    %154 = vector.shape_cast %148 : vector<2x32xf32> to vector<2x1x32xf32>
    tpu.vector_store %arg8[%c0_108, %c8_109, %c0_110], %154 {strides = array<i32>} : memref<2x20x32xf32, #tpu.memory_space<vmem>>, vector<2x1x32xf32>,
    %c0_111 = arith.constant 0 : index
    %c4_112 = arith.constant 4 : index
    %c0_113 = arith.constant 0 : index
    %155 = vector.load %arg3[%c0_111, %c4_112, %c0_113] : memref<8x5x32xf32, #tpu.memory_space<vmem>>, vector<8x1x32xf32>
    %156 = vector.shape_cast %155 : vector<8x1x32xf32> to vector<8x32xf32>
    %cst_114 = arith.constant dense<0.000000e+00> : vector<2x32xf32>
    %157 = tpu.matmul %118, %156, %cst_114 {dimension_numbers = #tpu.dot_dimension_numbers<[1], [0], [0], [1], [0, 0, 1, 1], [], []>} : vector<2x8xf32>, vector<8x32xf32>, vector<2x32xf32> -> vector<2x32xf32>
    %c0_115 = arith.constant 0 : index
    %c9 = arith.constant 9 : index
    %c0_116 = arith.constant 0 : index
    %158 = vector.load %arg7[%c0_115, %c9, %c0_116] : memref<2x28x32xf32, #tpu.memory_space<vmem>>, vector<2x1x32xf32>
    %159 = vector.shape_cast %158 : vector<2x1x32xf32> to vector<2x32xf32>
    %160 = vector.shape_cast %157 : vector<2x32xf32> to vector<2x1x32xf32>
    tpu.vector_store %arg7[%c0_115, %c9, %c0_116], %160 {strides = array<i32>} : memref<2x28x32xf32, #tpu.memory_space<vmem>>, vector<2x1x32xf32>,
    %c0_117 = arith.constant 0 : index
    %c9_118 = arith.constant 9 : index
    %c0_119 = arith.constant 0 : index
    %161 = vector.load %arg8[%c0_117, %c9_118, %c0_119] : memref<2x20x32xf32, #tpu.memory_space<vmem>>, vector<2x1x32xf32>
    %162 = vector.shape_cast %161 : vector<2x1x32xf32> to vector<2x32xf32>
    %163 = vector.shape_cast %157 : vector<2x32xf32> to vector<2x1x32xf32>
    tpu.vector_store %arg8[%c0_117, %c9_118, %c0_119], %163 {strides = array<i32>} : memref<2x20x32xf32, #tpu.memory_space<vmem>>, vector<2x1x32xf32>,
    %164 = arith.extui %53 : vector<2x8xi1> to vector<2x8xi32>
    %165 = arith.sitofp %164 : vector<2x8xi32> to vector<2x8xf32>
    %c0_120 = arith.constant 0 : index
    %c0_121 = arith.constant 0 : index
    %c0_122 = arith.constant 0 : index
    %166 = vector.load %arg3[%c0_120, %c0_121, %c0_122] : memref<8x5x32xf32, #tpu.memory_space<vmem>>, vector<8x1x32xf32>
    %167 = vector.shape_cast %166 : vector<8x1x32xf32> to vector<8x32xf32>
    %cst_123 = arith.constant dense<0.000000e+00> : vector<2x32xf32>
    %168 = tpu.matmul %165, %167, %cst_123 {dimension_numbers = #tpu.dot_dimension_numbers<[1], [0], [0], [1], [0, 0, 1, 1], [], []>} : vector<2x8xf32>, vector<8x32xf32>, vector<2x32xf32> -> vector<2x32xf32>
    %c0_124 = arith.constant 0 : index
    %c10 = arith.constant 10 : index
    %c0_125 = arith.constant 0 : index
    %169 = vector.load %arg7[%c0_124, %c10, %c0_125] : memref<2x28x32xf32, #tpu.memory_space<vmem>>, vector<2x1x32xf32>
    %170 = vector.shape_cast %169 : vector<2x1x32xf32> to vector<2x32xf32>
    %171 = vector.shape_cast %168 : vector<2x32xf32> to vector<2x1x32xf32>
    tpu.vector_store %arg7[%c0_124, %c10, %c0_125], %171 {strides = array<i32>} : memref<2x28x32xf32, #tpu.memory_space<vmem>>, vector<2x1x32xf32>,
    %c0_126 = arith.constant 0 : index
    %c10_127 = arith.constant 10 : index
    %c0_128 = arith.constant 0 : index
    %172 = vector.load %arg8[%c0_126, %c10_127, %c0_128] : memref<2x20x32xf32, #tpu.memory_space<vmem>>, vector<2x1x32xf32>
    %173 = vector.shape_cast %172 : vector<2x1x32xf32> to vector<2x32xf32>
    %174 = vector.shape_cast %168 : vector<2x32xf32> to vector<2x1x32xf32>
    tpu.vector_store %arg8[%c0_126, %c10_127, %c0_128], %174 {strides = array<i32>} : memref<2x20x32xf32, #tpu.memory_space<vmem>>, vector<2x1x32xf32>,
    %c0_129 = arith.constant 0 : index
    %c1_130 = arith.constant 1 : index
    %c0_131 = arith.constant 0 : index
    %175 = vector.load %arg3[%c0_129, %c1_130, %c0_131] : memref<8x5x32xf32, #tpu.memory_space<vmem>>, vector<8x1x32xf32>
    %176 = vector.shape_cast %175 : vector<8x1x32xf32> to vector<8x32xf32>
    %cst_132 = arith.constant dense<0.000000e+00> : vector<2x32xf32>
    %177 = tpu.matmul %165, %176, %cst_132 {dimension_numbers = #tpu.dot_dimension_numbers<[1], [0], [0], [1], [0, 0, 1, 1], [], []>} : vector<2x8xf32>, vector<8x32xf32>, vector<2x32xf32> -> vector<2x32xf32>
    %c0_133 = arith.constant 0 : index
    %c11 = arith.constant 11 : index
    %c0_134 = arith.constant 0 : index
    %178 = vector.load %arg7[%c0_133, %c11, %c0_134] : memref<2x28x32xf32, #tpu.memory_space<vmem>>, vector<2x1x32xf32>
    %179 = vector.shape_cast %178 : vector<2x1x32xf32> to vector<2x32xf32>
    %180 = vector.shape_cast %177 : vector<2x32xf32> to vector<2x1x32xf32>
    tpu.vector_store %arg7[%c0_133, %c11, %c0_134], %180 {strides = array<i32>} : memref<2x28x32xf32, #tpu.memory_space<vmem>>, vector<2x1x32xf32>,
    %c0_135 = arith.constant 0 : index
    %c11_136 = arith.constant 11 : index
    %c0_137 = arith.constant 0 : index
    %181 = vector.load %arg8[%c0_135, %c11_136, %c0_137] : memref<2x20x32xf32, #tpu.memory_space<vmem>>, vector<2x1x32xf32>
    %182 = vector.shape_cast %181 : vector<2x1x32xf32> to vector<2x32xf32>
    %183 = vector.shape_cast %177 : vector<2x32xf32> to vector<2x1x32xf32>
    tpu.vector_store %arg8[%c0_135, %c11_136, %c0_137], %183 {strides = array<i32>} : memref<2x20x32xf32, #tpu.memory_space<vmem>>, vector<2x1x32xf32>,
    %c0_138 = arith.constant 0 : index
    %c2_139 = arith.constant 2 : index
    %c0_140 = arith.constant 0 : index
    %184 = vector.load %arg3[%c0_138, %c2_139, %c0_140] : memref<8x5x32xf32, #tpu.memory_space<vmem>>, vector<8x1x32xf32>
    %185 = vector.shape_cast %184 : vector<8x1x32xf32> to vector<8x32xf32>
    %cst_141 = arith.constant dense<0.000000e+00> : vector<2x32xf32>
    %186 = tpu.matmul %165, %185, %cst_141 {dimension_numbers = #tpu.dot_dimension_numbers<[1], [0], [0], [1], [0, 0, 1, 1], [], []>} : vector<2x8xf32>, vector<8x32xf32>, vector<2x32xf32> -> vector<2x32xf32>
    %c0_142 = arith.constant 0 : index
    %c12 = arith.constant 12 : index
    %c0_143 = arith.constant 0 : index
    %187 = vector.load %arg7[%c0_142, %c12, %c0_143] : memref<2x28x32xf32, #tpu.memory_space<vmem>>, vector<2x1x32xf32>
    %188 = vector.shape_cast %187 : vector<2x1x32xf32> to vector<2x32xf32>
    %189 = vector.shape_cast %186 : vector<2x32xf32> to vector<2x1x32xf32>
    tpu.vector_store %arg7[%c0_142, %c12, %c0_143], %189 {strides = array<i32>} : memref<2x28x32xf32, #tpu.memory_space<vmem>>, vector<2x1x32xf32>,
    %c0_144 = arith.constant 0 : index
    %c12_145 = arith.constant 12 : index
    %c0_146 = arith.constant 0 : index
    %190 = vector.load %arg8[%c0_144, %c12_145, %c0_146] : memref<2x20x32xf32, #tpu.memory_space<vmem>>, vector<2x1x32xf32>
    %191 = vector.shape_cast %190 : vector<2x1x32xf32> to vector<2x32xf32>
    %192 = vector.shape_cast %186 : vector<2x32xf32> to vector<2x1x32xf32>
    tpu.vector_store %arg8[%c0_144, %c12_145, %c0_146], %192 {strides = array<i32>} : memref<2x20x32xf32, #tpu.memory_space<vmem>>, vector<2x1x32xf32>,
    %c0_147 = arith.constant 0 : index
    %c3_148 = arith.constant 3 : index
    %c0_149 = arith.constant 0 : index
    %193 = vector.load %arg3[%c0_147, %c3_148, %c0_149] : memref<8x5x32xf32, #tpu.memory_space<vmem>>, vector<8x1x32xf32>
    %194 = vector.shape_cast %193 : vector<8x1x32xf32> to vector<8x32xf32>
    %cst_150 = arith.constant dense<0.000000e+00> : vector<2x32xf32>
    %195 = tpu.matmul %165, %194, %cst_150 {dimension_numbers = #tpu.dot_dimension_numbers<[1], [0], [0], [1], [0, 0, 1, 1], [], []>} : vector<2x8xf32>, vector<8x32xf32>, vector<2x32xf32> -> vector<2x32xf32>
    %c0_151 = arith.constant 0 : index
    %c13 = arith.constant 13 : index
    %c0_152 = arith.constant 0 : index
    %196 = vector.load %arg7[%c0_151, %c13, %c0_152] : memref<2x28x32xf32, #tpu.memory_space<vmem>>, vector<2x1x32xf32>
    %197 = vector.shape_cast %196 : vector<2x1x32xf32> to vector<2x32xf32>
    %198 = vector.shape_cast %195 : vector<2x32xf32> to vector<2x1x32xf32>
    tpu.vector_store %arg7[%c0_151, %c13, %c0_152], %198 {strides = array<i32>} : memref<2x28x32xf32, #tpu.memory_space<vmem>>, vector<2x1x32xf32>,
    %c0_153 = arith.constant 0 : index
    %c13_154 = arith.constant 13 : index
    %c0_155 = arith.constant 0 : index
    %199 = vector.load %arg8[%c0_153, %c13_154, %c0_155] : memref<2x20x32xf32, #tpu.memory_space<vmem>>, vector<2x1x32xf32>
    %200 = vector.shape_cast %199 : vector<2x1x32xf32> to vector<2x32xf32>
    %201 = vector.shape_cast %195 : vector<2x32xf32> to vector<2x1x32xf32>
    tpu.vector_store %arg8[%c0_153, %c13_154, %c0_155], %201 {strides = array<i32>} : memref<2x20x32xf32, #tpu.memory_space<vmem>>, vector<2x1x32xf32>,
    %c0_156 = arith.constant 0 : index
    %c4_157 = arith.constant 4 : index
    %c0_158 = arith.constant 0 : index
    %202 = vector.load %arg3[%c0_156, %c4_157, %c0_158] : memref<8x5x32xf32, #tpu.memory_space<vmem>>, vector<8x1x32xf32>
    %203 = vector.shape_cast %202 : vector<8x1x32xf32> to vector<8x32xf32>
    %cst_159 = arith.constant dense<0.000000e+00> : vector<2x32xf32>
    %204 = tpu.matmul %165, %203, %cst_159 {dimension_numbers = #tpu.dot_dimension_numbers<[1], [0], [0], [1], [0, 0, 1, 1], [], []>} : vector<2x8xf32>, vector<8x32xf32>, vector<2x32xf32> -> vector<2x32xf32>
    %c0_160 = arith.constant 0 : index
    %c14 = arith.constant 14 : index
    %c0_161 = arith.constant 0 : index
    %205 = vector.load %arg7[%c0_160, %c14, %c0_161] : memref<2x28x32xf32, #tpu.memory_space<vmem>>, vector<2x1x32xf32>
    %206 = vector.shape_cast %205 : vector<2x1x32xf32> to vector<2x32xf32>
    %207 = vector.shape_cast %204 : vector<2x32xf32> to vector<2x1x32xf32>
    tpu.vector_store %arg7[%c0_160, %c14, %c0_161], %207 {strides = array<i32>} : memref<2x28x32xf32, #tpu.memory_space<vmem>>, vector<2x1x32xf32>,
    %c0_162 = arith.constant 0 : index
    %c14_163 = arith.constant 14 : index
    %c0_164 = arith.constant 0 : index
    %208 = vector.load %arg8[%c0_162, %c14_163, %c0_164] : memref<2x20x32xf32, #tpu.memory_space<vmem>>, vector<2x1x32xf32>
    %209 = vector.shape_cast %208 : vector<2x1x32xf32> to vector<2x32xf32>
    %210 = vector.shape_cast %204 : vector<2x32xf32> to vector<2x1x32xf32>
    tpu.vector_store %arg8[%c0_162, %c14_163, %c0_164], %210 {strides = array<i32>} : memref<2x20x32xf32, #tpu.memory_space<vmem>>, vector<2x1x32xf32>,
    %211 = arith.extui %66 : vector<2x8xi1> to vector<2x8xi32>
    %212 = arith.sitofp %211 : vector<2x8xi32> to vector<2x8xf32>
    %c0_165 = arith.constant 0 : index
    %c0_166 = arith.constant 0 : index
    %c0_167 = arith.constant 0 : index
    %213 = vector.load %arg3[%c0_165, %c0_166, %c0_167] : memref<8x5x32xf32, #tpu.memory_space<vmem>>, vector<8x1x32xf32>
    %214 = vector.shape_cast %213 : vector<8x1x32xf32> to vector<8x32xf32>
    %cst_168 = arith.constant dense<0.000000e+00> : vector<2x32xf32>
    %215 = tpu.matmul %212, %214, %cst_168 {dimension_numbers = #tpu.dot_dimension_numbers<[1], [0], [0], [1], [0, 0, 1, 1], [], []>} : vector<2x8xf32>, vector<8x32xf32>, vector<2x32xf32> -> vector<2x32xf32>
    %c0_169 = arith.constant 0 : index
    %c15 = arith.constant 15 : index
    %c0_170 = arith.constant 0 : index
    %216 = vector.load %arg7[%c0_169, %c15, %c0_170] : memref<2x28x32xf32, #tpu.memory_space<vmem>>, vector<2x1x32xf32>
    %217 = vector.shape_cast %216 : vector<2x1x32xf32> to vector<2x32xf32>
    %218 = vector.shape_cast %215 : vector<2x32xf32> to vector<2x1x32xf32>
    tpu.vector_store %arg7[%c0_169, %c15, %c0_170], %218 {strides = array<i32>} : memref<2x28x32xf32, #tpu.memory_space<vmem>>, vector<2x1x32xf32>,
    %c0_171 = arith.constant 0 : index
    %c15_172 = arith.constant 15 : index
    %c0_173 = arith.constant 0 : index
    %219 = vector.load %arg8[%c0_171, %c15_172, %c0_173] : memref<2x20x32xf32, #tpu.memory_space<vmem>>, vector<2x1x32xf32>
    %220 = vector.shape_cast %219 : vector<2x1x32xf32> to vector<2x32xf32>
    %221 = vector.shape_cast %215 : vector<2x32xf32> to vector<2x1x32xf32>
    tpu.vector_store %arg8[%c0_171, %c15_172, %c0_173], %221 {strides = array<i32>} : memref<2x20x32xf32, #tpu.memory_space<vmem>>, vector<2x1x32xf32>,
    %c0_174 = arith.constant 0 : index
    %c1_175 = arith.constant 1 : index
    %c0_176 = arith.constant 0 : index
    %222 = vector.load %arg3[%c0_174, %c1_175, %c0_176] : memref<8x5x32xf32, #tpu.memory_space<vmem>>, vector<8x1x32xf32>
    %223 = vector.shape_cast %222 : vector<8x1x32xf32> to vector<8x32xf32>
    %cst_177 = arith.constant dense<0.000000e+00> : vector<2x32xf32>
    %224 = tpu.matmul %212, %223, %cst_177 {dimension_numbers = #tpu.dot_dimension_numbers<[1], [0], [0], [1], [0, 0, 1, 1], [], []>} : vector<2x8xf32>, vector<8x32xf32>, vector<2x32xf32> -> vector<2x32xf32>
    %c0_178 = arith.constant 0 : index
    %c16 = arith.constant 16 : index
    %c0_179 = arith.constant 0 : index
    %225 = vector.load %arg7[%c0_178, %c16, %c0_179] : memref<2x28x32xf32, #tpu.memory_space<vmem>>, vector<2x1x32xf32>
    %226 = vector.shape_cast %225 : vector<2x1x32xf32> to vector<2x32xf32>
    %227 = vector.shape_cast %224 : vector<2x32xf32> to vector<2x1x32xf32>
    tpu.vector_store %arg7[%c0_178, %c16, %c0_179], %227 {strides = array<i32>} : memref<2x28x32xf32, #tpu.memory_space<vmem>>, vector<2x1x32xf32>,
    %c0_180 = arith.constant 0 : index
    %c16_181 = arith.constant 16 : index
    %c0_182 = arith.constant 0 : index
    %228 = vector.load %arg8[%c0_180, %c16_181, %c0_182] : memref<2x20x32xf32, #tpu.memory_space<vmem>>, vector<2x1x32xf32>
    %229 = vector.shape_cast %228 : vector<2x1x32xf32> to vector<2x32xf32>
    %230 = vector.shape_cast %224 : vector<2x32xf32> to vector<2x1x32xf32>
    tpu.vector_store %arg8[%c0_180, %c16_181, %c0_182], %230 {strides = array<i32>} : memref<2x20x32xf32, #tpu.memory_space<vmem>>, vector<2x1x32xf32>,
    %c0_183 = arith.constant 0 : index
    %c2_184 = arith.constant 2 : index
    %c0_185 = arith.constant 0 : index
    %231 = vector.load %arg3[%c0_183, %c2_184, %c0_185] : memref<8x5x32xf32, #tpu.memory_space<vmem>>, vector<8x1x32xf32>
    %232 = vector.shape_cast %231 : vector<8x1x32xf32> to vector<8x32xf32>
    %cst_186 = arith.constant dense<0.000000e+00> : vector<2x32xf32>
    %233 = tpu.matmul %212, %232, %cst_186 {dimension_numbers = #tpu.dot_dimension_numbers<[1], [0], [0], [1], [0, 0, 1, 1], [], []>} : vector<2x8xf32>, vector<8x32xf32>, vector<2x32xf32> -> vector<2x32xf32>
    %c0_187 = arith.constant 0 : index
    %c17 = arith.constant 17 : index
    %c0_188 = arith.constant 0 : index
    %234 = vector.load %arg7[%c0_187, %c17, %c0_188] : memref<2x28x32xf32, #tpu.memory_space<vmem>>, vector<2x1x32xf32>
    %235 = vector.shape_cast %234 : vector<2x1x32xf32> to vector<2x32xf32>
    %236 = vector.shape_cast %233 : vector<2x32xf32> to vector<2x1x32xf32>
    tpu.vector_store %arg7[%c0_187, %c17, %c0_188], %236 {strides = array<i32>} : memref<2x28x32xf32, #tpu.memory_space<vmem>>, vector<2x1x32xf32>,
    %c0_189 = arith.constant 0 : index
    %c17_190 = arith.constant 17 : index
    %c0_191 = arith.constant 0 : index
    %237 = vector.load %arg8[%c0_189, %c17_190, %c0_191] : memref<2x20x32xf32, #tpu.memory_space<vmem>>, vector<2x1x32xf32>
    %238 = vector.shape_cast %237 : vector<2x1x32xf32> to vector<2x32xf32>
    %239 = vector.shape_cast %233 : vector<2x32xf32> to vector<2x1x32xf32>
    tpu.vector_store %arg8[%c0_189, %c17_190, %c0_191], %239 {strides = array<i32>} : memref<2x20x32xf32, #tpu.memory_space<vmem>>, vector<2x1x32xf32>,
    %c0_192 = arith.constant 0 : index
    %c3_193 = arith.constant 3 : index
    %c0_194 = arith.constant 0 : index
    %240 = vector.load %arg3[%c0_192, %c3_193, %c0_194] : memref<8x5x32xf32, #tpu.memory_space<vmem>>, vector<8x1x32xf32>
    %241 = vector.shape_cast %240 : vector<8x1x32xf32> to vector<8x32xf32>
    %cst_195 = arith.constant dense<0.000000e+00> : vector<2x32xf32>
    %242 = tpu.matmul %212, %241, %cst_195 {dimension_numbers = #tpu.dot_dimension_numbers<[1], [0], [0], [1], [0, 0, 1, 1], [], []>} : vector<2x8xf32>, vector<8x32xf32>, vector<2x32xf32> -> vector<2x32xf32>
    %c0_196 = arith.constant 0 : index
    %c18 = arith.constant 18 : index
    %c0_197 = arith.constant 0 : index
    %243 = vector.load %arg7[%c0_196, %c18, %c0_197] : memref<2x28x32xf32, #tpu.memory_space<vmem>>, vector<2x1x32xf32>
    %244 = vector.shape_cast %243 : vector<2x1x32xf32> to vector<2x32xf32>
    %245 = vector.shape_cast %242 : vector<2x32xf32> to vector<2x1x32xf32>
    tpu.vector_store %arg7[%c0_196, %c18, %c0_197], %245 {strides = array<i32>} : memref<2x28x32xf32, #tpu.memory_space<vmem>>, vector<2x1x32xf32>,
    %c0_198 = arith.constant 0 : index
    %c18_199 = arith.constant 18 : index
    %c0_200 = arith.constant 0 : index
    %246 = vector.load %arg8[%c0_198, %c18_199, %c0_200] : memref<2x20x32xf32, #tpu.memory_space<vmem>>, vector<2x1x32xf32>
    %247 = vector.shape_cast %246 : vector<2x1x32xf32> to vector<2x32xf32>
    %248 = vector.shape_cast %242 : vector<2x32xf32> to vector<2x1x32xf32>
    tpu.vector_store %arg8[%c0_198, %c18_199, %c0_200], %248 {strides = array<i32>} : memref<2x20x32xf32, #tpu.memory_space<vmem>>, vector<2x1x32xf32>,
    %c0_201 = arith.constant 0 : index
    %c4_202 = arith.constant 4 : index
    %c0_203 = arith.constant 0 : index
    %249 = vector.load %arg3[%c0_201, %c4_202, %c0_203] : memref<8x5x32xf32, #tpu.memory_space<vmem>>, vector<8x1x32xf32>
    %250 = vector.shape_cast %249 : vector<8x1x32xf32> to vector<8x32xf32>
    %cst_204 = arith.constant dense<0.000000e+00> : vector<2x32xf32>
    %251 = tpu.matmul %212, %250, %cst_204 {dimension_numbers = #tpu.dot_dimension_numbers<[1], [0], [0], [1], [0, 0, 1, 1], [], []>} : vector<2x8xf32>, vector<8x32xf32>, vector<2x32xf32> -> vector<2x32xf32>
    %c0_205 = arith.constant 0 : index
    %c19 = arith.constant 19 : index
    %c0_206 = arith.constant 0 : index
    %252 = vector.load %arg7[%c0_205, %c19, %c0_206] : memref<2x28x32xf32, #tpu.memory_space<vmem>>, vector<2x1x32xf32>
    %253 = vector.shape_cast %252 : vector<2x1x32xf32> to vector<2x32xf32>
    %254 = vector.shape_cast %251 : vector<2x32xf32> to vector<2x1x32xf32>
    tpu.vector_store %arg7[%c0_205, %c19, %c0_206], %254 {strides = array<i32>} : memref<2x28x32xf32, #tpu.memory_space<vmem>>, vector<2x1x32xf32>,
    %c0_207 = arith.constant 0 : index
    %c19_208 = arith.constant 19 : index
    %c0_209 = arith.constant 0 : index
    %255 = vector.load %arg8[%c0_207, %c19_208, %c0_209] : memref<2x20x32xf32, #tpu.memory_space<vmem>>, vector<2x1x32xf32>
    %256 = vector.shape_cast %255 : vector<2x1x32xf32> to vector<2x32xf32>
    %257 = vector.shape_cast %251 : vector<2x32xf32> to vector<2x1x32xf32>
    tpu.vector_store %arg8[%c0_207, %c19_208, %c0_209], %257 {strides = array<i32>} : memref<2x20x32xf32, #tpu.memory_space<vmem>>, vector<2x1x32xf32>,
    %c0_210 = arith.constant 0 : index
    %c20 = arith.constant 20 : index
    %c0_211 = arith.constant 0 : index
    %258 = vector.load %arg7[%c0_210, %c20, %c0_211] : memref<2x28x32xf32, #tpu.memory_space<vmem>>, vector<2x8x32xf32>
    tpu.vector_store %arg7[%c0_210, %c20, %c0_211], %0 {strides = array<i32>} : memref<2x28x32xf32, #tpu.memory_space<vmem>>, vector<2x8x32xf32>,
    return
  }
  func.func @transform_0(%arg0: i32) -> (i32, i32, i32) {
    %c0_i32 = arith.constant 0 : i32
    %c0_i32_0 = arith.constant 0 : i32
    %c0_i32_1 = arith.constant 0 : i32
    return %arg0, %c0_i32, %c0_i32_0 : i32, i32, i32
  }
  func.func @transform_1(%arg0: i32) -> (i32, i32) {
    %c0_i32 = arith.constant 0 : i32
    %c0_i32_0 = arith.constant 0 : i32
    %c0_i32_1 = arith.constant 0 : i32
    return %c0_i32, %c0_i32_0 : i32, i32
  }
  func.func @transform_2(%arg0: i32) -> (i32, i32, i32) {
    %c0_i32 = arith.constant 0 : i32
    %c0_i32_0 = arith.constant 0 : i32
    %c0_i32_1 = arith.constant 0 : i32
    %c0_i32_2 = arith.constant 0 : i32
    return %c0_i32, %c0_i32_0, %c0_i32_1 : i32, i32, i32
  }
  func.func @transform_3(%arg0: i32) -> (i32, i32) {
    %c0_i32 = arith.constant 0 : i32
    %c0_i32_0 = arith.constant 0 : i32
    return %arg0, %c0_i32 : i32, i32
  }
  func.func @transform_4(%arg0: i32) -> (i32, i32) {
    %c0_i32 = arith.constant 0 : i32
    %c0_i32_0 = arith.constant 0 : i32
    return %arg0, %c0_i32 : i32, i32
  }
  func.func @transform_5(%arg0: i32) -> (i32, i32) {
    %c0_i32 = arith.constant 0 : i32
    %c0_i32_0 = arith.constant 0 : i32
    return %arg0, %c0_i32 : i32, i32
  }
  func.func @transform_6(%arg0: i32) -> (i32, i32, i32) {
    %c0_i32 = arith.constant 0 : i32
    %c0_i32_0 = arith.constant 0 : i32
    %c0_i32_1 = arith.constant 0 : i32
    return %arg0, %c0_i32, %c0_i32_0 : i32, i32, i32
  }
  func.func @transform_7(%arg0: i32) -> (i32, i32, i32) {
    %c0_i32 = arith.constant 0 : i32
    %c0_i32_0 = arith.constant 0 : i32
    %c0_i32_1 = arith.constant 0 : i32
    return %arg0, %c0_i32, %c0_i32_0 : i32, i32, i32
  }
}

</mosaic_0001>

<bundles_post_ra>
// kernel: tpu_custom_call.1
= control target key start
LH: loop header
LB: loop body
LE: loop exit
PB: predicated region body
PF: predicated region fallthrough
CT: control target
= control target key end

     0   :  { %13 = vsyncpa [#allocation3], 0  ;;  %vm23_vm0 = vcmask 261120   ;;  %s4404_s0 = inlined_call_operand.vmem [shape: f32[2,8,32], index: 0, kind: input, shape index: {}]   ;;  %s4405_s1 = inlined_call_operand.vmem [shape: f32[32,8], index: 1, kind: input, shape index: {}]   ;;  %s4406_s2 = inlined_call_operand.vmem [shape: f32[8,5,32], index: 2, kind: input, shape index: {}]   ;;  %s4407_s3 = inlined_call_operand.hbm [shape: f32[2,32], index: 3, kind: output, shape index: {0}]   ;;  %s4408_s4 = inlined_call_operand.hbm [shape: f32[2,8], index: 4, kind: output, shape index: {1}]   ;;  %s4409_s5 = inlined_call_operand.hbm [shape: s32[2,4], index: 5, kind: output, shape index: {2}]   ;;  %s4410_s6 = inlined_call_operand.vmem [shape: f32[2,28,32], index: 6, kind: output, shape index: {3}]   ;;  %s4411_s7 = inlined_call_operand.vmem [shape: f32[2,20,32], index: 7, kind: output, shape index: {4}]  }
   0x1   :  { %v21_v0 = vld [vmem:[%s4404_s0] sm:$0xff]  ;;  %v22_v1 = vld [vmem:[%s4404_s0 + $0x8] sm:$0xff] }
   0x2   :  { %v24_v2 = vsel %vm23_vm0, %v21_v0, 0.0  ;;  %v31_v3 = vsel %vm23_vm0, %v22_v1, 0.0  ;;  %2825 = vst.msk [vmem:[%s4410_s6 + $0x14] sm:$0xff] %vm23_vm0, %v21_v0  ;;  %2826 = vst.msk [vmem:[%s4410_s6 + $0x34] sm:$0xff] %vm23_vm0, %v22_v1 }
   0x3   :  { %14 = vsyncpa [#allocation5], 0  ;;  %v25_v4 = vrot.slane %v24_v2, 4  ;;  %v32_v5 = vrot.slane %v31_v3, 4  ;;  %vm44_vm1 = vcmask 1041409   ;;  %vm47_vm2 = vcmask 254976  }
   0x4   :  { %v65_v22 = vld [vmem:[%s4405_s1] sm:$0xff]  ;;  %v66_v23 = vld [vmem:[%s4405_s1 + $0x8] sm:$0xff]  ;;  %v67_v24 = vld [vmem:[%s4405_s1 + $0x10] sm:$0xff]  ;;  %v3150_v25 = vmov 0.0|0.0   ;;  %vm3151_vm3 = vmmov 0   ;;  %v3152_v28 = vmov 0.0   ;;  %v143_v41 = vlaneseq }
   0x5   :  { %v26_v6 = vadd.f32 %v25_v4, %v24_v2  ;;  %v33_v7 = vadd.f32 %v32_v5, %v31_v3  ;;  %3057 = vmatprep.subr.bf16.mxu0 %v3150_v25  ;;  %v3058_v26 = vpack.c.bf16 %v66_v23, %v65_v22  ;;  %v68_v27 = vld [vmem:[%s4405_s1 + $0x18] sm:$0xff]  ;;  %2954 = vmatprep.mubr.msk.f32.mxu0 %vm3151_vm3, %v3152_v28  ;;  %vm141_vm4 = vcmask 58368   ;;  %v200_v47 = vld [vmem:[%s4406_s2 + $0x8] sm:$0x1]  ;;  %v601_v48 = vld [vmem:[%s4406_s2 + $0xb] sm:$0x1] }
   0x6   :  { %2957 = vmatprep.subr.mxu1 %v3152_v28  ;;  %2959 = vmatprep.mubr.msk.f32.mxu1 %vm3151_vm3, %v3152_v28  ;;  %v3061_v29 = vpack.c.bf16 %v68_v27, %v67_v24  ;;  %v144_v42 = vand.u32 127, %v143_v41  ;;  %v201_v49 = vld [vmem:[%s4406_s2 + $0x10] sm:$0x1]  ;;  %v215_v50 = vrot.slane %v200_v47, 7  ;;  %v602_v51 = vld [vmem:[%s4406_s2 + $0x13] sm:$0x1] }
   0x7   :  { %v27_v8 = vrot.slane %v26_v6, 2  ;;  %v34_v9 = vrot.slane %v33_v7, 2  ;;  %3059 = vmatpush3.bf16.msra.mxu0 %v3058_v26  ;;  %v616_v52 = vrot.slane %v601_v48, 7  ;;  %v199_v53 = vld [vmem:[%s4406_s2] sm:$0x1]  ;;  %v217_v55 = vrot.slane %v201_v49, 6 }
   0x8   :  { %3060 = vmatprep.subr.bf16.mxu0 %v3150_v25  ;;  %v3245_v43 = vcvt.s32.f32 %v144_v42  ;;  %v202_v54 = vld [vmem:[%s4406_s2 + $0x18] sm:$0x1]  ;;  %v618_v56 = vrot.slane %v602_v51, 6  ;;  %v203_v57 = vld [vmem:[%s4406_s2 + $0x20] sm:$0x1]  ;;  %v216_v58 = vsel %vm44_vm1, %v215_v50, %v199_v53  ;;  %vm218_vm6 = vcmask 1042434  }
   0x9   :  { %v28_v10 = vadd.f32 %v27_v8, %v26_v6  ;;  %v35_v11 = vadd.f32 %v34_v9, %v33_v7  ;;  %v220_v59 = vrot.slane %v202_v54, 5  ;;  %v600_v60 = vld [vmem:[%s4406_s2 + $0x3] sm:$0x1]  ;;  %v204_v61 = vld [vmem:[%s4406_s2 + $0x28] sm:$0x1]  ;;  %v219_v62 = vsel %vm218_vm6, %v217_v55, %v216_v58  ;;  %s3155_s8 = smov [#allocation2]  }
   0xa   :  { %vm221_vm7 = vcmask 1043459   ;;  %v223_v63 = vrot.slane %v203_v57, 4  ;;  %v603_v0 = vld [vmem:[%s4406_s2 + $0x1b] sm:$0x1]  ;;  %v617_v1 = vsel %vm44_vm1, %v616_v52, %v600_v60  ;;  %v205_v2 = vld [vmem:[%s4406_s2 + $0x30] sm:$0x1] }
   0xb   :  { %v29_v12 = vrot.slane %v28_v10, 1  ;;  %v36_v13 = vrot.slane %v35_v11, 1  ;;  %3062 = vmatpush3.bf16.msra.mxu0 %v3061_v29  ;;  %v222_v3 = vsel %vm221_vm7, %v220_v59, %v219_v62  ;;  %vm224_vm8 = vcmask 1044484   ;;  %v604_v5 = vld [vmem:[%s4406_s2 + $0x23] sm:$0x1]  ;;  %s2833_s0 = sshll.u32 %s3155_s8, 4  ;;  %s2834_s0 = int_to_ptr.vmem [resolvable:$true] %s2833_s0 }
   0xc   :  { %2972 = vmatprep.subr.mxu0 %v3152_v28  ;;  %v226_v4 = vrot.slane %v204_v61, 3  ;;  %v206_v6 = vld [vmem:[%s4406_s2 + $0x38] sm:$0x1]  ;;  %v225_v7 = vsel %vm224_vm8, %v223_v63, %v222_v3  ;;  %vm227_vm9 = vcmask 1045509   ;;  %v229_v8 = vrot.slane %v205_v2, 2 }
   0xd   :  { %v30_v14 = vadd.f32 %v29_v12, %v28_v10  ;;  %v37_v15 = vadd.f32 %v36_v13, %v35_v11  ;;  %v605_v9 = vld [vmem:[%s4406_s2 + $0x2b] sm:$0x1]  ;;  %vm230_vm10 = vcmask 1046534   ;;  %v232_v11 = vrot.slane %v206_v6, 1  ;;  %v606_v12 = vld [vmem:[%s4406_s2 + $0x33] sm:$0x1] }
   0xe   :  { %v228_v10 = vsel %vm227_vm9, %v226_v4, %v225_v7  ;;  %v607_v13 = vld [vmem:[%s4406_s2 + $0x3b] sm:$0x1]  ;;  %vm233_vm11 = vcmask 1047559   ;;  %v341_v27 = vld [vmem:[%s4406_s2 + $0x9] sm:$0x1]  ;;  %vm236_vm12 = vcmask 64512  }
   0xf   :  { %v38_v16 = vmul.f32 0.125, %v30_v14  ;;  %v39_v17 = vmul.f32 0.125, %v37_v15  ;;  %v619_v14 = vsel %vm218_vm6, %v618_v56, %v617_v1  ;;  %v231_v15 = vsel %vm230_vm10, %v229_v8, %v228_v10  ;;  %v342_v29 = vld [vmem:[%s4406_s2 + $0x11] sm:$0x1]  ;;  %v344_v42 = vld [vmem:[%s4406_s2 + $0x21] sm:$0x1] }
  0x10   :  { %v628_v22 = vrot.slane %v607_v13, 1  ;;  %v732_v49 = vld [vmem:[%s4406_s2 + $0x14] sm:$0x1]  ;;  %v345_v51 = vld [vmem:[%s4406_s2 + $0x29] sm:$0x1]  ;;  %v362_v52 = vrot.slane %v344_v42, 4 }
  0x11   :  { %v40_v18 = vmul.f32 %v38_v16, %v38_v16  ;;  %v41_v19 = vmul.f32 %v39_v17, %v39_v17  ;;  %v730_v53 = vld [vmem:[%s4406_s2 + $0x4] sm:$0x1]  ;;  %v474_v55 = vld [vmem:[%s4406_s2 + $0x22] sm:$0x1]  ;;  %v733_v58 = vld [vmem:[%s4406_s2 + $0x1c] sm:$0x1] }
  0x12   :  { %v748_v59 = vrot.slane %v732_v49, 6  ;;  %v346_v60 = vld [vmem:[%s4406_s2 + $0x31] sm:$0x1]  ;;  %v364_v61 = vrot.slane %v345_v51, 3  ;;  %v492_v1 = vrot.slane %v474_v55, 4  ;;  %v750_v4 = vrot.slane %v733_v58, 5 }
  0x13   :  { %v45_v20 = vsel %vm44_vm1, %v41_v19, %v40_v18  ;;  %v234_v18 = vsel %vm233_vm11, %v232_v11, %v231_v15  ;;  %v624_v19 = vrot.slane %v605_v9, 3  ;;  %v734_v3 = vld [vmem:[%s4406_s2 + $0x24] sm:$0x1]  ;;  %v366_v6 = vrot.slane %v346_v60, 2  ;;  %v476_v9 = vld [vmem:[%s4406_s2 + $0x32] sm:$0x1] }
  0x14   :  { %v48_v21 = vsel %vm47_vm2, %v45_v20, 0.0  ;;  %v626_v20 = vrot.slane %v606_v12, 2  ;;  %2958 = vmatpush3.msra.mxu1 %v234_v18  ;;  %v735_v12 = vld [vmem:[%s4406_s2 + $0x2c] sm:$0x1]  ;;  %v752_v13 = vrot.slane %v734_v3, 4  ;;  %v496_v18 = vrot.slane %v476_v9, 2 }
  0x15   :  { %49 = vadd.xlane.f32.xlu0 %v48_v21  ;;  %2962 = vmatprep.subr.mxu1 %v3152_v28  ;;  %v863_v42 = vld [vmem:[%s4406_s2 + $0x8] sm:$0x1]  ;;  %v862_v49 = vld [vmem:[%s4406_s2] sm:$0x1]  ;;  %v998_v60 = vld [vmem:[%s4406_s2 + $0x19] sm:$0x1] }
  0x16   :  { %v1015_v3 = vrot.slane %v998_v60, 5  ;;  %vm335_vm15 = vcmask 253952  }
  0xa2   :  { %v50_v30 = vpop.xlane.xlu0 %49 }
  0xa3   :  { %v51_v31 = vmax.f32 %v50_v30, 1e-12  ;;  %v356_v30 = vrot.slane %v341_v27, 7 }
  0xa5   :  { %3078 = vrsqrt.f32 %v51_v31  ;;  %v340_v31 = vld [vmem:[%s4406_s2 + $0x1] sm:$0x1] }
  0xaf   :  { %v3079_v32 = vpop.eup %3078 }
  0xb0   :  { %v54_v33 = vrot.slane %v3079_v32, 1  ;;  %v57_v35 = vmul.f32 %v3079_v32, %v38_v16  ;;  %v620_v16 = vrot.slane %v603_v0, 5  ;;  %v471_v32 = vld [vmem:[%s4406_s2 + $0xa] sm:$0x1] }
  0xb1   :  { %v475_v0 = vld [vmem:[%s4406_s2 + $0x2a] sm:$0x1] }
  0xb2   :  { %v58_v34 = vmul.f32 %v54_v33, %v39_v17  ;;  %v622_v17 = vrot.slane %v604_v5, 4  ;;  %v621_v21 = vsel %vm221_vm7, %v620_v16, %v619_v14  ;;  %v343_v33 = vld [vmem:[%s4406_s2 + $0x19] sm:$0x1]  ;;  %v494_v10 = vrot.slane %v475_v0, 3 }
  0xb3   :  { %v347_v5 = vld [vmem:[%s4406_s2 + $0x39] sm:$0x1] }
  0xb4   :  { %v61_v36 = vrot.slane %v58_v34, 7  ;;  %v623_v23 = vsel %vm224_vm8, %v622_v17, %v621_v21  ;;  %v358_v34 = vrot.slane %v342_v29, 6  ;;  %v368_v14 = vrot.slane %v347_v5, 1  ;;  %v477_v17 = vld [vmem:[%s4406_s2 + $0x3a] sm:$0x1] }
  0xb5   :  { %v625_v24 = vsel %vm227_vm9, %v624_v19, %v623_v23  ;;  %v754_v21 = vrot.slane %v735_v12, 3  ;;  %v1002_v12 = vld [vmem:[%s4406_s2 + $0x39] sm:$0x1] }
  0xb6   :  { %v62_v37 = vsel %vm44_vm1, %v61_v36, %v57_v35  ;;  %v627_v25 = vsel %vm230_vm10, %v626_v20, %v625_v24  ;;  %v357_v35 = vsel %vm44_vm1, %v356_v30, %v340_v31  ;;  %v472_v36 = vld [vmem:[%s4406_s2 + $0x12] sm:$0x1]  ;;  %v736_v20 = vld [vmem:[%s4406_s2 + $0x34] sm:$0x1]  ;;  %v737_v30 = vld [vmem:[%s4406_s2 + $0x3c] sm:$0x1] }
  0xb7   :  { %2955 = vmatmul.mubr.msk.f32.vlgmr.msra.gmra.mrb[0].mxu0 %vm23_vm0, %v62_v37  ;;  %64 = vst.msk [vmem:[#allocation2] sm:$0x3] %vm47_vm2, %v62_v37  ;;  %v629_v26 = vsel %vm233_vm11, %v628_v22, %v627_v25  ;;  %v486_v37 = vrot.slane %v471_v32, 7  ;;  %v488_v47 = vrot.slane %v472_v36, 6  ;;  %v498_v25 = vrot.slane %v477_v17, 1 }
  0xb8   :  { %2974 = vmatprep.mubr.msk.f32.mxu0 %vm3151_vm3, %v3152_v28  ;;  %2973 = vmatpush3.msra.mxu0 %v629_v26  ;;  %v756_v31 = vrot.slane %v736_v20, 2 }
  0xb9   :  { %2982 = vmatprep.subr.mxu0 %v3152_v28 }
 0x18a   :  { %v3238_v38 = vpop.f32.mrb[0].mxu0 }
 0x18b   :  { %v2956_v39 = vpop.f32.mrb[1].mxu0  ;;  %v146_v40 = vsel %vm141_vm4, %v3238_v38, -inf  ;;  %142 = vst.msk [vmem:[#allocation4] sm:$0x3] %vm141_vm4, %v3238_v38 }
 0x18c   :  { %147 = vmax.xlane.f32.xlu0 %v146_v40  ;;  %v470_v39 = vld [vmem:[%s4406_s2 + $0x2] sm:$0x1]  ;;  %v731_v40 = vld [vmem:[%s4406_s2 + $0xc] sm:$0x1] }
 0x18d   :  { %v487_v48 = vsel %vm44_vm1, %v486_v37, %v470_v39  ;;  %v746_v50 = vrot.slane %v731_v40, 7 }
 0x18e   :  { %v489_v57 = vsel %vm218_vm6, %v488_v47, %v487_v48  ;;  %v997_v47 = vld [vmem:[%s4406_s2 + $0x11] sm:$0x1] }
 0x18f   :  { %v747_v62 = vsel %vm44_vm1, %v746_v50, %v730_v53  ;;  %v865_v50 = vld [vmem:[%s4406_s2 + $0x18] sm:$0x1]  ;;  %v866_v53 = vld [vmem:[%s4406_s2 + $0x20] sm:$0x1] }
 0x190   :  { %v749_v7 = vsel %vm218_vm6, %v748_v59, %v747_v62  ;;  %v882_v55 = vrot.slane %v865_v50, 5  ;;  %v884_v59 = vrot.slane %v866_v53, 4  ;;  %v868_v62 = vld [vmem:[%s4406_s2 + $0x30] sm:$0x1] }
 0x191   :  { %v751_v15 = vsel %vm221_vm7, %v750_v4, %v749_v7  ;;  %v869_v4 = vld [vmem:[%s4406_s2 + $0x38] sm:$0x1]  ;;  %v1000_v7 = vld [vmem:[%s4406_s2 + $0x29] sm:$0x1] }
 0x192   :  { %v753_v23 = vsel %vm224_vm8, %v752_v13, %v751_v15 }
 0x219   :  { %v148_v44 = vpop.xlane.xlu0 %147 }
 0x21a   :  { %vm149_vm5 = vcmp.eq.f32.partialorder %v3238_v38, %v148_v44  ;;  %v360_v44 = vrot.slane %v343_v33, 5  ;;  %v755_v33 = vsel %vm227_vm9, %v754_v21, %v753_v23 }
 0x21b   :  { %v150_v45 = vsel %vm149_vm5, %v3245_v43, 8.0 }
 0x21c   :  { %v151_v46 = vsel %vm141_vm4, %v150_v45, inf  ;;  %v359_v45 = vsel %vm218_vm6, %v358_v34, %v357_v35  ;;  %v758_v34 = vrot.slane %v737_v30, 1  ;;  %v757_v35 = vsel %vm230_vm10, %v756_v31, %v755_v33 }
 0x21d   :  { %152 = vmin.xlane.f32.xlu1 %v151_v46  ;;  %v473_v46 = vld [vmem:[%s4406_s2 + $0x1a] sm:$0x1]  ;;  %v361_v54 = vsel %vm221_vm7, %v360_v44, %v359_v45  ;;  %v996_v44 = vld [vmem:[%s4406_s2 + $0x9] sm:$0x1]  ;;  %v864_v45 = vld [vmem:[%s4406_s2 + $0x10] sm:$0x1] }
 0x21e   :  { %v490_v56 = vrot.slane %v473_v46, 5  ;;  %v363_v63 = vsel %vm224_vm8, %v362_v52, %v361_v54  ;;  %v759_v36 = vsel %vm233_vm11, %v758_v34, %v757_v35  ;;  %v878_v46 = vrot.slane %v863_v42, 7 }
 0x21f   :  { %v365_v8 = vsel %vm227_vm9, %v364_v61, %v363_v63  ;;  %v1011_v48 = vrot.slane %v996_v44, 7  ;;  %v880_v51 = vrot.slane %v864_v45, 6  ;;  %v1013_v52 = vrot.slane %v997_v47, 6 }
 0x220   :  { %v491_v2 = vsel %vm221_vm7, %v490_v56, %v489_v57  ;;  %v367_v16 = vsel %vm230_vm10, %v366_v6, %v365_v8  ;;  %v879_v54 = vsel %vm44_vm1, %v878_v46, %v862_v49  ;;  %v995_v56 = vld [vmem:[%s4406_s2 + $0x1] sm:$0x1]  ;;  %v867_v57 = vld [vmem:[%s4406_s2 + $0x28] sm:$0x1]  ;;  %v888_v6 = vrot.slane %v868_v62, 2 }
 0x221   :  { %v493_v11 = vsel %vm224_vm8, %v492_v1, %v491_v2  ;;  %v369_v24 = vsel %vm233_vm11, %v368_v14, %v367_v16  ;;  %v881_v58 = vsel %vm218_vm6, %v880_v51, %v879_v54  ;;  %v1012_v61 = vsel %vm44_vm1, %v1011_v48, %v995_v56  ;;  %v999_v1 = vld [vmem:[%s4406_s2 + $0x21] sm:$0x1]  ;;  %v1126_v62 = vld [vmem:[%s4406_s2 + $0xa] sm:$0x1] }
 0x222   :  { %v495_v19 = vsel %vm227_vm9, %v494_v10, %v493_v11  ;;  %v883_v63 = vsel %vm221_vm7, %v882_v55, %v881_v58  ;;  %v886_v0 = vrot.slane %v867_v57, 3  ;;  %v1014_v2 = vsel %vm218_vm6, %v1013_v52, %v1012_v61  ;;  %v1001_v11 = vld [vmem:[%s4406_s2 + $0x31] sm:$0x1] }
 0x223   :  { %v497_v29 = vsel %vm230_vm10, %v496_v18, %v495_v19  ;;  %v885_v5 = vsel %vm224_vm8, %v884_v59, %v883_v63  ;;  %v1017_v8 = vrot.slane %v999_v1, 4  ;;  %v890_v10 = vrot.slane %v869_v4, 1  ;;  %v1256_v63 = vld [vmem:[%s4406_s2 + $0xb] sm:$0x1]  ;;  %v1127_v1 = vld [vmem:[%s4406_s2 + $0x12] sm:$0x1] }
 0x224   :  { %v887_v9 = vsel %vm227_vm9, %v886_v0, %v885_v5  ;;  %v1016_v13 = vsel %vm221_vm7, %v1015_v3, %v1014_v2  ;;  %v1019_v14 = vrot.slane %v1000_v7, 3  ;;  %v1021_v17 = vrot.slane %v1001_v11, 2  ;;  %v1125_v0 = vld [vmem:[%s4406_s2 + $0x2] sm:$0x1]  ;;  %v1257_v3 = vld [vmem:[%s4406_s2 + $0x13] sm:$0x1] }
 0x225   :  { %v889_v15 = vsel %vm230_vm10, %v888_v6, %v887_v9  ;;  %v1018_v16 = vsel %vm224_vm8, %v1017_v8, %v1016_v13  ;;  %v1023_v18 = vrot.slane %v1002_v12, 1  ;;  %v1141_v2 = vrot.slane %v1126_v62, 7  ;;  %v1386_v5 = vld [vmem:[%s4406_s2 + $0xc] sm:$0x1]  ;;  %v1255_v6 = vld [vmem:[%s4406_s2 + $0x3] sm:$0x1] }
 0x226   :  { %v891_v19 = vsel %vm233_vm11, %v890_v10, %v889_v15  ;;  %v1020_v20 = vsel %vm227_vm9, %v1019_v14, %v1018_v16  ;;  %v1271_v4 = vrot.slane %v1256_v63, 7  ;;  %v1128_v7 = vld [vmem:[%s4406_s2 + $0x1a] sm:$0x1]  ;;  %v1143_v8 = vrot.slane %v1127_v1, 6  ;;  %v1258_v10 = vld [vmem:[%s4406_s2 + $0x1b] sm:$0x1] }
 0x227   :  { %v1022_v21 = vsel %vm230_vm10, %v1021_v17, %v1020_v20  ;;  %v1142_v9 = vsel %vm44_vm1, %v1141_v2, %v1125_v0  ;;  %v1273_v11 = vrot.slane %v1257_v3, 6  ;;  %v1387_v12 = vld [vmem:[%s4406_s2 + $0x14] sm:$0x1]  ;;  %v1401_v13 = vrot.slane %v1386_v5, 7  ;;  %v1385_v15 = vld [vmem:[%s4406_s2 + $0x4] sm:$0x1] }
 0x228   :  { %v1024_v23 = vsel %vm233_vm11, %v1023_v18, %v1022_v21  ;;  %v1272_v14 = vsel %vm44_vm1, %v1271_v4, %v1255_v6  ;;  %v1129_v16 = vld [vmem:[%s4406_s2 + $0x22] sm:$0x1]  ;;  %v1145_v17 = vrot.slane %v1128_v7, 5  ;;  %v1144_v18 = vsel %vm218_vm6, %v1143_v8, %v1142_v9  ;;  %v1388_v21 = vld [vmem:[%s4406_s2 + $0x1c] sm:$0x1] }
 0x229   :  { %v1275_v20 = vrot.slane %v1258_v10, 5 }
 0x2aa   :  { %v3397_v22 = vpop.xlane.xlu1 %152 }
 0x2ab   :  { %vm154_vm13 = vcmp.eq.f32.partialorder %v3245_v43, %v3397_v22 }
 0x2ac   :  { %v2877_v26 = vsel %vm154_vm13, 1.0, %v3152_v28  ;;  %v3405_v27 = vsel %vm154_vm13, -1e+30, %v3238_v38  ;;  %v499_v38 = vsel %vm233_vm11, %v498_v25, %v497_v29  ;;  %v315_v29 = vshrl.u32 %v143_v41, 7 }
 0x2ad   :  { %2960 = vmatmul.mubr.msk.f32.vlgmr.msra.gmra.mrb[0].mxu1 %vm236_vm12, %v2877_v26  ;;  %2975 = vmatmul.mubr.msk.f32.vlgmr.msra.gmra.mrb[2].mxu0 %vm236_vm12, %v2877_v26  ;;  %v157_v32 = vsel %vm141_vm4, %v3405_v27, -inf }
 0x2ae   :  { %158 = vmax.xlane.f32.xlu1 %v157_v32  ;;  %2963 = vmatpush3.msra.mxu1 %v369_v24  ;;  %v3153_v24 = vmov 1966171168  }
 0x2af   :  { %2964 = vmatprep.mubr.msk.f32.mxu1 %vm3151_vm3, %v3152_v28  ;;  %2967 = vmatprep.subr.mxu1 %v3152_v28  ;;  %v312_v25 = vunpack.c.l.s4 %v3153_v24  ;;  %v1274_v24 = vsel %vm218_vm6, %v1273_v11, %v1272_v14  ;;  %v1518_v11 = vld [vmem:[%s4406_s2 + $0x8] sm:$0x1] }
 0x2b0   :  { %2984 = vmatprep.mubr.msk.f32.mxu0 %vm3151_vm3, %v3152_v28  ;;  %2983 = vmatpush3.msra.mxu0 %v891_v19  ;;  %v1259_v19 = vld [vmem:[%s4406_s2 + $0x23] sm:$0x1]  ;;  %v1533_v14 = vrot.slane %v1518_v11, 7 }
 0x2b1   :  { %2965 = vmatmul.mubr.msk.f32.vlgmr.msra.gmra.mrb[2].mxu1 %vm236_vm12, %v2877_v26  ;;  %2992 = vmatprep.subr.mxu0 %v3152_v28 }
 0x2b2   :  { %2968 = vmatpush3.msra.mxu1 %v499_v38  ;;  %2969 = vmatprep.mubr.msk.f32.mxu1 %vm3151_vm3, %v3152_v28 }
 0x2b3   :  { %2977 = vmatprep.subr.mxu1 %v3152_v28 }
 0x2b5   :  { %2970 = vmatmul.mubr.msk.f32.vlgmr.msra.gmra.mrb[4].mxu1 %vm236_vm12, %v2877_v26 }
 0x2b6   :  { %2978 = vmatpush3.msra.mxu1 %v759_v36  ;;  %2979 = vmatprep.mubr.msk.f32.mxu1 %vm3151_vm3, %v3152_v28 }
 0x2b7   :  { %2987 = vmatprep.subr.mxu1 %v3152_v28 }
 0x2b9   :  { %2980 = vmatmul.mubr.msk.f32.vlgmr.msra.gmra.mrb[6].mxu1 %vm236_vm12, %v2877_v26  ;;  %v313_v26 = vunpack.c.0.s8 %v312_v25  ;;  %v1402_v25 = vsel %vm44_vm1, %v1401_v13, %v1385_v15  ;;  %v1519_v13 = vld [vmem:[%s4406_s2 + $0x10] sm:$0x1]  ;;  %v1652_v15 = vld [vmem:[%s4406_s2 + $0x11] sm:$0x1] }
 0x2ba   :  { %2989 = vmatprep.mubr.msk.f32.mxu1 %vm3151_vm3, %v3152_v28  ;;  %2988 = vmatpush3.msra.mxu1 %v1024_v23  ;;  %v1403_v23 = vrot.slane %v1387_v12, 6  ;;  %v1651_v12 = vld [vmem:[%s4406_s2 + $0x9] sm:$0x1] }
 0x2bb   :  { %2997 = vmatprep.subr.mxu1 %v3152_v28  ;;  %v3503_v30 = vsub.s32 %v313_v26, %v315_v29  ;;  %v1130_v26 = vld [vmem:[%s4406_s2 + $0x2a] sm:$0x1]  ;;  %v1147_v29 = vrot.slane %v1129_v16, 4  ;;  %v1666_v16 = vrot.slane %v1651_v12, 7 }
 0x33b   :  { %v159_v37 = vpop.xlane.xlu1 %158 }
 0x33c   :  { %vm160_vm14 = vcmp.eq.f32.partialorder %v3405_v27, %v159_v37 }
 0x33d   :  { %v161_v39 = vsel %vm160_vm14, %v3245_v43, 8.0 }
 0x33e   :  { %v162_v40 = vsel %vm141_vm4, %v161_v39, inf }
 0x33f   :  { %163 = vmin.xlane.f32.xlu0 %v162_v40 }
 0x380   :  { %v306_v31 = vpop.f32.mrb[0].mxu1  ;;  %v697_v32 = vpop.f32.mrb[2].mxu0 }
 0x381   :  { %v317_v33 = vrot.slane %v306_v31, %v3503_v30  ;;  %v708_v38 = vrot.slane %v697_v32, %v3503_v30  ;;  %v2961_v34 = vpop.f32.mrb[1].mxu1  ;;  %v2976_v35 = vpop.f32.mrb[3].mxu0  ;;  %v1146_v31 = vsel %vm221_vm7, %v1145_v17, %v1144_v18  ;;  %v1260_v32 = vld [vmem:[%s4406_s2 + $0x2b] sm:$0x1]  ;;  %v1517_v17 = vld [vmem:[%s4406_s2] sm:$0x1] }
 0x382   :  { %v1405_v34 = vrot.slane %v1388_v21, 5  ;;  %v1276_v35 = vsel %vm221_vm7, %v1275_v20, %v1274_v24  ;;  %v1520_v18 = vld [vmem:[%s4406_s2 + $0x18] sm:$0x1]  ;;  %v1668_v20 = vrot.slane %v1652_v15, 6  ;;  %v1521_v21 = vld [vmem:[%s4406_s2 + $0x20] sm:$0x1] }
 0x383   :  { %v318_v36 = vcombine.high %v317_v33, %v317_v33  ;;  %v325_v37 = vrot.slane %v317_v33, %v3503_v30  ;;  %v709_v39 = vcombine.high %v708_v38, %v708_v38  ;;  %v716_v40 = vrot.slane %v708_v38, %v3503_v30  ;;  %v1389_v38 = vld [vmem:[%s4406_s2 + $0x24] sm:$0x1] }
 0x384   :  { %v437_v42 = vpop.f32.mrb[2].mxu1  ;;  %v1277_v33 = vrot.slane %v1259_v19, 4  ;;  %v1535_v19 = vrot.slane %v1519_v13, 6  ;;  %v1537_v24 = vrot.slane %v1520_v18, 5 }
 0x385   :  { %v332_v41 = vrot.slane %v318_v36, %v3503_v30  ;;  %336 = vst.msk [vmem:[%s4410_s6] sm:$0x1] %vm335_vm15, %v325_v37  ;;  %338 = vst.msk [vmem:[%s4411_s7] sm:$0x1] %vm335_vm15, %v325_v37  ;;  %v723_v44 = vrot.slane %v709_v39, %v3503_v30  ;;  %v448_v45 = vrot.slane %v437_v42, %v3503_v30  ;;  %v2966_v46 = vpop.f32.mrb[3].mxu1  ;;  %v1149_v39 = vrot.slane %v1130_v26, 3 }
 0x386   :  { %726 = vst.msk [vmem:[%s4410_s6 + $0x3] sm:$0x1] %vm335_vm15, %v716_v40  ;;  %728 = vst.msk [vmem:[%s4411_s7 + $0x3] sm:$0x1] %vm335_vm15, %v716_v40  ;;  %v1404_v36 = vsel %vm218_vm6, %v1403_v23, %v1402_v25  ;;  %v1131_v37 = vld [vmem:[%s4406_s2 + $0x32] sm:$0x1]  ;;  %v1148_v40 = vsel %vm224_vm8, %v1147_v29, %v1146_v31  ;;  %v1278_v46 = vsel %vm224_vm8, %v1277_v33, %v1276_v35 }
 0x387   :  { %337 = vst.msk [vmem:[%s4410_s6 + $0x20] sm:$0x1] %vm335_vm15, %v332_v41  ;;  %339 = vst.msk [vmem:[%s4411_s7 + $0x18] sm:$0x1] %vm335_vm15, %v332_v41  ;;  %v449_v47 = vcombine.high %v448_v45, %v448_v45  ;;  %v456_v48 = vrot.slane %v448_v45, %v3503_v30  ;;  %v1261_v42 = vld [vmem:[%s4406_s2 + $0x33] sm:$0x1]  ;;  %v1534_v23 = vsel %vm44_vm1, %v1533_v14, %v1517_v17 }
 0x388   :  { %727 = vst.msk [vmem:[%s4410_s6 + $0x23] sm:$0x1] %vm335_vm15, %v723_v44  ;;  %729 = vst.msk [vmem:[%s4411_s7 + $0x1b] sm:$0x1] %vm335_vm15, %v723_v44  ;;  %v567_v49 = vpop.f32.mrb[4].mxu1  ;;  %v1279_v41 = vrot.slane %v1260_v32, 3  ;;  %v1536_v29 = vsel %vm218_vm6, %v1535_v19, %v1534_v23 }
 0x389   :  { %v463_v50 = vrot.slane %v449_v47, %v3503_v30  ;;  %466 = vst.msk [vmem:[%s4410_s6 + $0x1] sm:$0x1] %vm335_vm15, %v456_v48  ;;  %468 = vst.msk [vmem:[%s4411_s7 + $0x1] sm:$0x1] %vm335_vm15, %v456_v48  ;;  %v578_v51 = vrot.slane %v567_v49, %v3503_v30  ;;  %v2971_v52 = vpop.f32.mrb[5].mxu1  ;;  %v1407_v45 = vrot.slane %v1389_v38, 4  ;;  %v1406_v47 = vsel %vm221_vm7, %v1405_v34, %v1404_v36 }
 0x38a   :  { %v1390_v44 = vld [vmem:[%s4406_s2 + $0x2c] sm:$0x1]  ;;  %v1132_v48 = vld [vmem:[%s4406_s2 + $0x3a] sm:$0x1]  ;;  %v1151_v49 = vrot.slane %v1131_v37, 2  ;;  %v1281_v52 = vrot.slane %v1261_v42, 2  ;;  %v1538_v34 = vsel %vm221_vm7, %v1537_v24, %v1536_v29 }
 0x38b   :  { %467 = vst.msk [vmem:[%s4410_s6 + $0x21] sm:$0x1] %vm335_vm15, %v463_v50  ;;  %469 = vst.msk [vmem:[%s4411_s7 + $0x19] sm:$0x1] %vm335_vm15, %v463_v50  ;;  %v579_v53 = vcombine.high %v578_v51, %v578_v51  ;;  %v586_v54 = vrot.slane %v578_v51, %v3503_v30  ;;  %v1150_v50 = vsel %vm227_vm9, %v1149_v39, %v1148_v40  ;;  %v1262_v51 = vld [vmem:[%s4406_s2 + $0x3b] sm:$0x1] }
 0x38c   :  { %v827_v55 = vpop.f32.mrb[6].mxu1  ;;  %v1650_v25 = vld [vmem:[%s4406_s2 + $0x1] sm:$0x1]  ;;  %v1522_v26 = vld [vmem:[%s4406_s2 + $0x28] sm:$0x1]  ;;  %v1539_v31 = vrot.slane %v1521_v21, 4 }
 0x38d   :  { %v593_v56 = vrot.slane %v579_v53, %v3503_v30  ;;  %596 = vst.msk [vmem:[%s4410_s6 + $0x2] sm:$0x1] %vm335_vm15, %v586_v54  ;;  %598 = vst.msk [vmem:[%s4411_s7 + $0x2] sm:$0x1] %vm335_vm15, %v586_v54  ;;  %v838_v57 = vrot.slane %v827_v55, %v3503_v30  ;;  %v2981_v58 = vpop.f32.mrb[7].mxu1  ;;  %v1409_v54 = vrot.slane %v1390_v44, 3  ;;  %v1280_v55 = vsel %vm227_vm9, %v1279_v41, %v1278_v46 }
 0x38e   :  { %v1391_v53 = vld [vmem:[%s4406_s2 + $0x34] sm:$0x1]  ;;  %v1152_v58 = vsel %vm230_vm10, %v1151_v49, %v1150_v50  ;;  %v1282_v62 = vsel %vm230_vm10, %v1281_v52, %v1280_v55  ;;  %v1653_v32 = vld [vmem:[%s4406_s2 + $0x19] sm:$0x1]  ;;  %v1667_v33 = vsel %vm44_vm1, %v1666_v16, %v1650_v25  ;;  %v1523_v38 = vld [vmem:[%s4406_s2 + $0x30] sm:$0x1]  ;;  %v1540_v42 = vsel %vm224_vm8, %v1539_v31, %v1538_v34 }
 0x38f   :  { %597 = vst.msk [vmem:[%s4410_s6 + $0x22] sm:$0x1] %vm335_vm15, %v593_v56  ;;  %599 = vst.msk [vmem:[%s4411_s7 + $0x1a] sm:$0x1] %vm335_vm15, %v593_v56  ;;  %v839_v59 = vcombine.high %v838_v57, %v838_v57  ;;  %v846_v60 = vrot.slane %v838_v57, %v3503_v30  ;;  %v1408_v56 = vsel %vm224_vm8, %v1407_v45, %v1406_v47  ;;  %v1153_v57 = vrot.slane %v1132_v48, 1 }
 0x390   :  { %v1410_v63 = vsel %vm227_vm9, %v1409_v54, %v1408_v56  ;;  %v1541_v35 = vrot.slane %v1522_v26, 3  ;;  %v1654_v36 = vld [vmem:[%s4406_s2 + $0x21] sm:$0x1]  ;;  %v1669_v37 = vsel %vm218_vm6, %v1668_v20, %v1667_v33  ;;  %v1670_v39 = vrot.slane %v1653_v32, 5  ;;  %v1524_v40 = vld [vmem:[%s4406_s2 + $0x38] sm:$0x1] }
 0x391   :  { %v853_v61 = vrot.slane %v839_v59, %v3503_v30  ;;  %856 = vst.msk [vmem:[%s4410_s6 + $0x4] sm:$0x1] %vm335_vm15, %v846_v60  ;;  %858 = vst.msk [vmem:[%s4411_s7 + $0x4] sm:$0x1] %vm335_vm15, %v846_v60  ;;  %v1283_v59 = vrot.slane %v1262_v51, 1  ;;  %v1154_v1 = vsel %vm233_vm11, %v1153_v57, %v1152_v58  ;;  %v1543_v41 = vrot.slane %v1523_v38, 2 }
 0x392   :  { %v1392_v60 = vld [vmem:[%s4406_s2 + $0x3c] sm:$0x1]  ;;  %v1655_v44 = vld [vmem:[%s4406_s2 + $0x29] sm:$0x1]  ;;  %v1672_v45 = vrot.slane %v1654_v36, 4  ;;  %v1542_v46 = vsel %vm227_vm9, %v1541_v35, %v1540_v42  ;;  %v1545_v47 = vrot.slane %v1524_v40, 1  ;;  %v1671_v50 = vsel %vm221_vm7, %v1670_v39, %v1669_v37 }
 0x393   :  { %857 = vst.msk [vmem:[%s4410_s6 + $0x24] sm:$0x1] %vm335_vm15, %v853_v61  ;;  %859 = vst.msk [vmem:[%s4411_s7 + $0x1c] sm:$0x1] %vm335_vm15, %v853_v61  ;;  %v1411_v61 = vrot.slane %v1391_v53, 2  ;;  %v1413_v2 = vrot.slane %v1392_v60, 1  ;;  %v1284_v5 = vsel %vm233_vm11, %v1283_v59, %v1282_v62  ;;  %v1544_v52 = vsel %vm230_vm10, %v1543_v41, %v1542_v46 }
 0x394   :  { %v1656_v48 = vld [vmem:[%s4406_s2 + $0x31] sm:$0x1]  ;;  %v1657_v49 = vld [vmem:[%s4406_s2 + $0x39] sm:$0x1]  ;;  %v1674_v51 = vrot.slane %v1655_v44, 3  ;;  %v1673_v53 = vsel %vm224_vm8, %v1672_v45, %v1671_v50  ;;  %v1546_v56 = vsel %vm233_vm11, %v1545_v47, %v1544_v52 }
 0x395   :  { %v1412_v6 = vsel %vm230_vm10, %v1411_v61, %v1410_v63  ;;  %v1676_v54 = vrot.slane %v1656_v48, 2  ;;  %v1678_v55 = vrot.slane %v1657_v49, 1  ;;  %v1781_v31 = vld [vmem:[%s4406_s2 + $0xa] sm:$0x1]  ;;  %v1911_v32 = vld [vmem:[%s4406_s2 + $0xb] sm:$0x1] }
 0x396   :  { %v1675_v57 = vsel %vm227_vm9, %v1674_v51, %v1673_v53  ;;  %v1780_v33 = vld [vmem:[%s4406_s2 + $0x2] sm:$0x1]  ;;  %v1782_v38 = vld [vmem:[%s4406_s2 + $0x12] sm:$0x1]  ;;  %v1796_v34 = vrot.slane %v1781_v31, 7  ;;  %v1926_v36 = vrot.slane %v1911_v32, 7 }
 0x397   :  { %v1677_v58 = vsel %vm230_vm10, %v1676_v54, %v1675_v57  ;;  %v1912_v35 = vld [vmem:[%s4406_s2 + $0x13] sm:$0x1]  ;;  %v2041_v37 = vld [vmem:[%s4406_s2 + $0xc] sm:$0x1]  ;;  %v1910_v39 = vld [vmem:[%s4406_s2 + $0x3] sm:$0x1] }
 0x398   :  { %v1679_v59 = vsel %vm233_vm11, %v1678_v55, %v1677_v58  ;;  %v1783_v40 = vld [vmem:[%s4406_s2 + $0x1a] sm:$0x1]  ;;  %v1798_v42 = vrot.slane %v1782_v38, 6  ;;  %v1797_v41 = vsel %vm44_vm1, %v1796_v34, %v1780_v33  ;;  %v1913_v44 = vld [vmem:[%s4406_s2 + $0x1b] sm:$0x1]  ;;  %v1928_v45 = vrot.slane %v1912_v35, 6 }
 0x399   :  { %v2042_v46 = vld [vmem:[%s4406_s2 + $0x14] sm:$0x1]  ;;  %v2056_v47 = vrot.slane %v2041_v37, 7  ;;  %v1927_v48 = vsel %vm44_vm1, %v1926_v36, %v1910_v39  ;;  %v2040_v49 = vld [vmem:[%s4406_s2 + $0x4] sm:$0x1]  ;;  %v1800_v51 = vrot.slane %v1783_v40, 5 }
 0x39a   :  { %v1784_v50 = vld [vmem:[%s4406_s2 + $0x22] sm:$0x1]  ;;  %v1799_v52 = vsel %vm218_vm6, %v1798_v42, %v1797_v41  ;;  %v1914_v53 = vld [vmem:[%s4406_s2 + $0x23] sm:$0x1]  ;;  %v1930_v54 = vrot.slane %v1913_v44, 5  ;;  %v1929_v57 = vsel %vm218_vm6, %v1928_v45, %v1927_v48 }
 0x39b   :  { %v2043_v55 = vld [vmem:[%s4406_s2 + $0x1c] sm:$0x1]  ;;  %v2057_v58 = vsel %vm44_vm1, %v2056_v47, %v2040_v49  ;;  %v2173_v44 = vld [vmem:[%s4406_s2 + $0x8] sm:$0x1]  ;;  %v2174_v45 = vld [vmem:[%s4406_s2 + $0x10] sm:$0x1] }
 0x39c   :  { %v2176_v47 = vld [vmem:[%s4406_s2 + $0x20] sm:$0x1]  ;;  %v2177_v48 = vld [vmem:[%s4406_s2 + $0x28] sm:$0x1]  ;;  %v2178_v49 = vld [vmem:[%s4406_s2 + $0x30] sm:$0x1] }
 0x3cc   :  { %v3689_v0 = vpop.xlane.xlu0 %163 }
 0x3cd   :  { %vm165_vm0 = vcmp.eq.f32.partialorder %v3245_v43, %v3689_v0 }
 0x3ce   :  { %v2883_v3 = vsel %vm165_vm0, 1.0, %v3152_v28  ;;  %v3696_v4 = vsel %vm165_vm0, -1e+30, %v3405_v27  ;;  %v1414_v27 = vsel %vm233_vm11, %v1413_v2, %v1412_v6 }
 0x3cf   :  { %2985 = vmatmul.mubr.msk.f32.vlgmr.msra.gmra.mrb[4].mxu0 %vm236_vm12, %v2883_v3  ;;  %2990 = vmatmul.mubr.msk.f32.vlgmr.msra.gmra.mrb[8].mxu1 %vm236_vm12, %v2883_v3  ;;  %v168_v7 = vsel %vm141_vm4, %v3696_v4, -inf }
 0x3d0   :  { %169 = vmax.xlane.f32.xlu1 %v168_v7  ;;  %2993 = vmatpush3.msra.mxu0 %v1154_v1 }
 0x3d1   :  { %2994 = vmatprep.mubr.msk.f32.mxu0 %vm3151_vm3, %v3152_v28  ;;  %2998 = vmatpush3.msra.mxu1 %v1284_v5 }
 0x3d2   :  { %2999 = vmatprep.mubr.msk.f32.mxu1 %vm3151_vm3, %v3152_v28  ;;  %3002 = vmatprep.subr.mxu0 %v3152_v28 }
 0x3d3   :  { %2995 = vmatmul.mubr.msk.f32.vlgmr.msra.gmra.mrb[6].mxu0 %vm236_vm12, %v2883_v3  ;;  %3000 = vmatmul.mubr.msk.f32.vlgmr.msra.gmra.mrb[10].mxu1 %vm236_vm12, %v2883_v3 }
 0x3d4   :  { %3003 = vmatpush3.msra.mxu0 %v1414_v27  ;;  %3004 = vmatprep.mubr.msk.f32.mxu0 %vm3151_vm3, %v3152_v28 }
 0x3d5   :  { %3007 = vmatprep.subr.mxu1 %v3152_v28  ;;  %3012 = vmatprep.subr.mxu0 %v3152_v28 }
 0x3d6   :  { %3009 = vmatprep.mubr.msk.f32.mxu1 %vm3151_vm3, %v3152_v28  ;;  %3008 = vmatpush3.msra.mxu1 %v1546_v56  ;;  %v2058_v56 = vrot.slane %v2042_v46, 6  ;;  %v2175_v46 = vld [vmem:[%s4406_s2 + $0x18] sm:$0x1] }
 0x3d7   :  { %3005 = vmatmul.mubr.msk.f32.vlgmr.msra.gmra.mrb[8].mxu0 %vm236_vm12, %v2883_v3  ;;  %3017 = vmatprep.subr.mxu1 %v3152_v28 }
 0x3d8   :  { %3014 = vmatprep.mubr.msk.f32.mxu0 %vm3151_vm3, %v3152_v28  ;;  %3013 = vmatpush3.msra.mxu0 %v1679_v59  ;;  %v1785_v59 = vld [vmem:[%s4406_s2 + $0x2a] sm:$0x1] }
 0x3d9   :  { %3022 = vmatprep.subr.mxu0 %v3152_v28 }
 0x45d   :  { %v170_v8 = vpop.xlane.xlu1 %169 }
 0x45e   :  { %vm171_vm2 = vcmp.eq.f32.partialorder %v3696_v4, %v170_v8 }
 0x45f   :  { %v172_v9 = vsel %vm171_vm2, %v3245_v43, 8.0 }
 0x460   :  { %v173_v10 = vsel %vm141_vm4, %v172_v9, inf }
 0x461   :  { %174 = vmin.xlane.f32.xlu0 %v173_v10 }
 0x4a2   :  { %v962_v60 = vpop.f32.mrb[4].mxu0  ;;  %v1092_v61 = vpop.f32.mrb[8].mxu1 }
 0x4a3   :  { %v973_v62 = vrot.slane %v962_v60, %v3503_v30  ;;  %v1103_v63 = vrot.slane %v1092_v61, %v3503_v30  ;;  %v2986_v1 = vpop.f32.mrb[5].mxu0  ;;  %v2991_v2 = vpop.f32.mrb[9].mxu1  ;;  %v1802_v60 = vrot.slane %v1784_v50, 4  ;;  %v1801_v61 = vsel %vm221_vm7, %v1800_v51, %v1799_v52  ;;  %v2179_v52 = vld [vmem:[%s4406_s2 + $0x38] sm:$0x1] }
 0x4a4   :  { %v2044_v1 = vld [vmem:[%s4406_s2 + $0x24] sm:$0x1]  ;;  %v2060_v2 = vrot.slane %v2043_v55, 5  ;;  %v2188_v50 = vrot.slane %v2173_v44, 7  ;;  %v2190_v51 = vrot.slane %v2174_v45, 6 }
 0x4a5   :  { %v974_v3 = vcombine.high %v973_v62, %v973_v62  ;;  %v981_v5 = vrot.slane %v973_v62, %v3503_v30  ;;  %v1104_v6 = vcombine.high %v1103_v63, %v1103_v63  ;;  %v1111_v7 = vrot.slane %v1103_v63, %v3503_v30  ;;  %v1915_v62 = vld [vmem:[%s4406_s2 + $0x2b] sm:$0x1] }
 0x4a6   :  { %v1222_v27 = vpop.f32.mrb[6].mxu0  ;;  %v1352_v8 = vpop.f32.mrb[10].mxu1  ;;  %v1932_v63 = vrot.slane %v1914_v53, 4  ;;  %v2192_v53 = vrot.slane %v2175_v46, 5 }
 0x4a7   :  { %v988_v9 = vrot.slane %v974_v3, %v3503_v30  ;;  %991 = vst.msk [vmem:[%s4410_s6 + $0x5] sm:$0x1] %vm335_vm15, %v981_v5  ;;  %993 = vst.msk [vmem:[%s4411_s7 + $0x5] sm:$0x1] %vm335_vm15, %v981_v5  ;;  %v1118_v10 = vrot.slane %v1104_v6, %v3503_v30  ;;  %v1233_v11 = vrot.slane %v1222_v27, %v3503_v30  ;;  %v2996_v13 = vpop.f32.mrb[7].mxu0  ;;  %v3001_v14 = vpop.f32.mrb[11].mxu1 }
 0x4a8   :  { %1121 = vst.msk [vmem:[%s4410_s6 + $0x6] sm:$0x1] %vm335_vm15, %v1111_v7  ;;  %1123 = vst.msk [vmem:[%s4411_s7 + $0x6] sm:$0x1] %vm335_vm15, %v1111_v7  ;;  %v1363_v12 = vrot.slane %v1352_v8, %v3503_v30  ;;  %v1931_v3 = vsel %vm221_vm7, %v1930_v54, %v1929_v57  ;;  %v2059_v5 = vsel %vm218_vm6, %v2058_v56, %v2057_v58  ;;  %v1786_v6 = vld [vmem:[%s4406_s2 + $0x32] sm:$0x1] }
 0x4a9   :  { %992 = vst.msk [vmem:[%s4410_s6 + $0x25] sm:$0x1] %vm335_vm15, %v988_v9  ;;  %994 = vst.msk [vmem:[%s4411_s7 + $0x1d] sm:$0x1] %vm335_vm15, %v988_v9  ;;  %v1234_v15 = vcombine.high %v1233_v11, %v1233_v11  ;;  %v1241_v16 = vrot.slane %v1233_v11, %v3503_v30  ;;  %v1804_v7 = vrot.slane %v1785_v59, 3  ;;  %v1803_v27 = vsel %vm224_vm8, %v1802_v60, %v1801_v61 }
 0x4aa   :  { %1122 = vst.msk [vmem:[%s4410_s6 + $0x26] sm:$0x1] %vm335_vm15, %v1118_v10  ;;  %1124 = vst.msk [vmem:[%s4411_s7 + $0x1e] sm:$0x1] %vm335_vm15, %v1118_v10  ;;  %v1364_v17 = vcombine.high %v1363_v12, %v1363_v12  ;;  %v1371_v18 = vrot.slane %v1363_v12, %v3503_v30  ;;  %v1482_v19 = vpop.f32.mrb[8].mxu0  ;;  %v1934_v9 = vrot.slane %v1915_v62, 3  ;;  %v1933_v12 = vsel %vm224_vm8, %v1932_v63, %v1931_v3 }
 0x4ab   :  { %v1248_v20 = vrot.slane %v1234_v15, %v3503_v30  ;;  %1251 = vst.msk [vmem:[%s4410_s6 + $0x7] sm:$0x1] %vm335_vm15, %v1241_v16  ;;  %1253 = vst.msk [vmem:[%s4411_s7 + $0x7] sm:$0x1] %vm335_vm15, %v1241_v16  ;;  %v1493_v23 = vrot.slane %v1482_v19, %v3503_v30  ;;  %v3006_v24 = vpop.f32.mrb[9].mxu0  ;;  %v2062_v11 = vrot.slane %v2044_v1, 4  ;;  %v2061_v13 = vsel %vm221_vm7, %v2060_v2, %v2059_v5 }
 0x4ac   :  { %v1378_v21 = vrot.slane %v1364_v17, %v3503_v30  ;;  %1381 = vst.msk [vmem:[%s4410_s6 + $0x8] sm:$0x1] %vm335_vm15, %v1371_v18  ;;  %1383 = vst.msk [vmem:[%s4411_s7 + $0x8] sm:$0x1] %vm335_vm15, %v1371_v18  ;;  %v1916_v8 = vld [vmem:[%s4406_s2 + $0x33] sm:$0x1]  ;;  %v1805_v16 = vsel %vm227_vm9, %v1804_v7, %v1803_v27 }
 0x4ad   :  { %1252 = vst.msk [vmem:[%s4410_s6 + $0x27] sm:$0x1] %vm335_vm15, %v1248_v20  ;;  %1254 = vst.msk [vmem:[%s4411_s7 + $0x1f] sm:$0x1] %vm335_vm15, %v1248_v20  ;;  %v1494_v25 = vcombine.high %v1493_v23, %v1493_v23  ;;  %v1501_v26 = vrot.slane %v1493_v23, %v3503_v30  ;;  %v2045_v10 = vld [vmem:[%s4406_s2 + $0x2c] sm:$0x1]  ;;  %v2063_v23 = vsel %vm224_vm8, %v2062_v11, %v2061_v13 }
 0x4ae   :  { %1382 = vst.msk [vmem:[%s4410_s6 + $0x28] sm:$0x1] %vm335_vm15, %v1378_v21  ;;  %1384 = vst.msk [vmem:[%s4411_s7 + $0x20] sm:$0x1] %vm335_vm15, %v1378_v21  ;;  %v1787_v14 = vld [vmem:[%s4406_s2 + $0x3a] sm:$0x1]  ;;  %v1935_v21 = vsel %vm227_vm9, %v1934_v9, %v1933_v12 }
 0x4af   :  { %v1508_v29 = vrot.slane %v1494_v25, %v3503_v30  ;;  %1511 = vst.msk [vmem:[%s4410_s6 + $0x9] sm:$0x1] %vm335_vm15, %v1501_v26  ;;  %1513 = vst.msk [vmem:[%s4411_s7 + $0x9] sm:$0x1] %vm335_vm15, %v1501_v26  ;;  %v1806_v15 = vrot.slane %v1786_v6, 2  ;;  %v1936_v18 = vrot.slane %v1916_v8, 2 }
 0x4b0   :  { %v1917_v17 = vld [vmem:[%s4406_s2 + $0x3b] sm:$0x1]  ;;  %v2046_v19 = vld [vmem:[%s4406_s2 + $0x34] sm:$0x1]  ;;  %v2064_v20 = vrot.slane %v2045_v10, 3  ;;  %v1808_v24 = vrot.slane %v1787_v14, 1 }
 0x4b1   :  { %1512 = vst.msk [vmem:[%s4410_s6 + $0x29] sm:$0x1] %vm335_vm15, %v1508_v29  ;;  %1514 = vst.msk [vmem:[%s4411_s7 + $0x21] sm:$0x1] %vm335_vm15, %v1508_v29  ;;  %v1807_v25 = vsel %vm230_vm10, %v1806_v15, %v1805_v16  ;;  %v1938_v26 = vrot.slane %v1917_v17, 1  ;;  %v2066_v31 = vrot.slane %v2046_v19, 2  ;;  %v1937_v32 = vsel %vm230_vm10, %v1936_v18, %v1935_v21 }
 0x4b2   :  { %v2047_v29 = vld [vmem:[%s4406_s2 + $0x3c] sm:$0x1]  ;;  %v2065_v33 = vsel %vm227_vm9, %v2064_v20, %v2063_v23  ;;  %v1809_v34 = vsel %vm233_vm11, %v1808_v24, %v1807_v25  ;;  %v2194_v54 = vrot.slane %v2176_v47, 4  ;;  %v2196_v56 = vrot.slane %v2177_v48, 3  ;;  %v2306_v6 = vld [vmem:[%s4406_s2 + $0x9] sm:$0x1] }
 0x4b3   :  { %v2068_v35 = vrot.slane %v2047_v29, 1  ;;  %v1939_v39 = vsel %vm233_vm11, %v1938_v26, %v1937_v32  ;;  %v2067_v40 = vsel %vm230_vm10, %v2066_v31, %v2065_v33  ;;  %v2198_v58 = vrot.slane %v2178_v49, 2  ;;  %v2307_v7 = vld [vmem:[%s4406_s2 + $0x11] sm:$0x1]  ;;  %v2305_v8 = vld [vmem:[%s4406_s2 + $0x1] sm:$0x1] }
 0x4b4   :  { %v2200_v60 = vrot.slane %v2179_v52, 1  ;;  %v2321_v27 = vrot.slane %v2306_v6, 7  ;;  %v2308_v9 = vld [vmem:[%s4406_s2 + $0x19] sm:$0x1]  ;;  %v2323_v10 = vrot.slane %v2307_v7, 6 }
 0x4b5   :  { %v2069_v41 = vsel %vm233_vm11, %v2068_v35, %v2067_v40  ;;  %v2309_v11 = vld [vmem:[%s4406_s2 + $0x21] sm:$0x1]  ;;  %v2325_v13 = vrot.slane %v2308_v9, 5  ;;  %v2310_v14 = vld [vmem:[%s4406_s2 + $0x29] sm:$0x1] }
 0x4b6   :  { %v2322_v12 = vsel %vm44_vm1, %v2321_v27, %v2305_v8  ;;  %v2327_v16 = vrot.slane %v2309_v11, 4  ;;  %v2311_v17 = vld [vmem:[%s4406_s2 + $0x31] sm:$0x1]  ;;  %v2329_v19 = vrot.slane %v2310_v14, 3  ;;  %v2312_v20 = vld [vmem:[%s4406_s2 + $0x39] sm:$0x1] }
 0x4b7   :  { %v2324_v15 = vsel %vm218_vm6, %v2323_v10, %v2322_v12  ;;  %v2331_v23 = vrot.slane %v2311_v17, 2  ;;  %v2333_v25 = vrot.slane %v2312_v20, 1  ;;  %v2696_v7 = vld [vmem:[%s4406_s2 + $0xc] sm:$0x1]  ;;  %v2565_v27 = vld [vmem:[%s4406_s2 + $0x3] sm:$0x1] }
 0x4b8   :  { %v2326_v18 = vsel %vm221_vm7, %v2325_v13, %v2324_v15  ;;  %v2438_v8 = vld [vmem:[%s4406_s2 + $0x1a] sm:$0x1]  ;;  %v2568_v11 = vld [vmem:[%s4406_s2 + $0x1b] sm:$0x1]  ;;  %v2697_v13 = vld [vmem:[%s4406_s2 + $0x14] sm:$0x1] }
 0x4b9   :  { %v2328_v21 = vsel %vm224_vm8, %v2327_v16, %v2326_v18  ;;  %v2711_v14 = vrot.slane %v2696_v7, 7  ;;  %v2695_v16 = vld [vmem:[%s4406_s2 + $0x4] sm:$0x1]  ;;  %v2439_v17 = vld [vmem:[%s4406_s2 + $0x22] sm:$0x1]  ;;  %v2455_v18 = vrot.slane %v2438_v8, 5 }
 0x4ba   :  { %v2330_v24 = vsel %vm227_vm9, %v2329_v19, %v2328_v21  ;;  %v2569_v20 = vld [vmem:[%s4406_s2 + $0x23] sm:$0x1]  ;;  %v2585_v21 = vrot.slane %v2568_v11, 5 }
 0x4bb   :  { %v2332_v26 = vsel %vm230_vm10, %v2331_v23, %v2330_v24  ;;  %v2698_v23 = vld [vmem:[%s4406_s2 + $0x1c] sm:$0x1]  ;;  %v2713_v24 = vrot.slane %v2697_v13, 6 }
 0x4bc   :  { %v2334_v29 = vsel %vm233_vm11, %v2333_v25, %v2332_v26  ;;  %v2712_v26 = vsel %vm44_vm1, %v2711_v14, %v2695_v16 }
 0x4ee   :  { %v3972_v38 = vpop.xlane.xlu0 %174 }
 0x4ef   :  { %vm176_vm5 = vcmp.eq.f32.partialorder %v3245_v43, %v3972_v38 }
 0x4f0   :  { %v2889_v36 = vsel %vm176_vm5, 1.0, %v3152_v28  ;;  %v178_v37 = vsel %vm176_vm5, -1e+30, %v3696_v4  ;;  %v2172_v4 = vld [vmem:[%s4406_s2] sm:$0x1] }
 0x4f1   :  { %3010 = vmatmul.mubr.msk.f32.vlgmr.msra.gmra.mrb[12].mxu1 %vm236_vm12, %v2889_v36  ;;  %3015 = vmatmul.mubr.msk.f32.vlgmr.msra.gmra.mrb[10].mxu0 %vm236_vm12, %v2889_v36  ;;  %v179_v42 = vsel %vm141_vm4, %v178_v37, -inf  ;;  %v2189_v55 = vsel %vm44_vm1, %v2188_v50, %v2172_v4 }
 0x4f2   :  { %180 = vmax.xlane.f32.xlu1 %v179_v42  ;;  %3018 = vmatpush3.msra.mxu1 %v1809_v34  ;;  %v2191_v57 = vsel %vm218_vm6, %v2190_v51, %v2189_v55 }
 0x4f3   :  { %3019 = vmatprep.mubr.msk.f32.mxu1 %vm3151_vm3, %v3152_v28  ;;  %3023 = vmatpush3.msra.mxu0 %v1939_v39  ;;  %v2193_v59 = vsel %vm221_vm7, %v2192_v53, %v2191_v57 }
 0x4f4   :  { %3024 = vmatprep.mubr.msk.f32.mxu0 %vm3151_vm3, %v3152_v28  ;;  %3027 = vmatprep.subr.mxu1 %v3152_v28  ;;  %v2195_v61 = vsel %vm224_vm8, %v2194_v54, %v2193_v59 }
 0x4f5   :  { %3020 = vmatmul.mubr.msk.f32.vlgmr.msra.gmra.mrb[14].mxu1 %vm236_vm12, %v2889_v36  ;;  %3025 = vmatmul.mubr.msk.f32.vlgmr.msra.gmra.mrb[12].mxu0 %vm236_vm12, %v2889_v36  ;;  %v2197_v62 = vsel %vm227_vm9, %v2196_v56, %v2195_v61 }
 0x4f6   :  { %3028 = vmatpush3.msra.mxu1 %v2069_v41  ;;  %3029 = vmatprep.mubr.msk.f32.mxu1 %vm3151_vm3, %v3152_v28  ;;  %v2199_v63 = vsel %vm230_vm10, %v2198_v58, %v2197_v62  ;;  %v2436_v62 = vld [vmem:[%s4406_s2 + $0xa] sm:$0x1] }
 0x4f7   :  { %3032 = vmatprep.subr.mxu0 %v3152_v28  ;;  %3037 = vmatprep.subr.mxu1 %v3152_v28  ;;  %v2201_v1 = vsel %vm233_vm11, %v2200_v60, %v2199_v63  ;;  %v2566_v63 = vld [vmem:[%s4406_s2 + $0xb] sm:$0x1] }
 0x4f8   :  { %3034 = vmatprep.mubr.msk.f32.mxu0 %vm3151_vm3, %v3152_v28  ;;  %3033 = vmatpush3.msra.mxu0 %v2201_v1  ;;  %v2435_v1 = vld [vmem:[%s4406_s2 + $0x2] sm:$0x1]  ;;  %v2581_v6 = vrot.slane %v2566_v63, 7  ;;  %v2702_v63 = vld [vmem:[%s4406_s2 + $0x3c] sm:$0x1] }
 0x4f9   :  { %3030 = vmatmul.mubr.msk.f32.vlgmr.msra.gmra.mrb[16].mxu1 %vm236_vm12, %v2889_v36  ;;  %3042 = vmatprep.subr.mxu0 %v3152_v28  ;;  %v2723_v8 = vrot.slane %v2702_v63, 1 }
 0x4fa   :  { %3039 = vmatprep.mubr.msk.f32.mxu1 %vm3151_vm3, %v3152_v28  ;;  %3038 = vmatpush3.msra.mxu1 %v2334_v29  ;;  %v2582_v15 = vsel %vm44_vm1, %v2581_v6, %v2565_v27  ;;  %v2440_v29 = vld [vmem:[%s4406_s2 + $0x2a] sm:$0x1] }
 0x4fb   :  { %3047 = vmatprep.subr.mxu1 %v3152_v28 }
 0x57f   :  { %v181_v2 = vpop.xlane.xlu1 %180 }
 0x580   :  { %vm182_vm13 = vcmp.eq.f32.partialorder %v178_v37, %v181_v2  ;;  %v2437_v2 = vld [vmem:[%s4406_s2 + $0x12] sm:$0x1] }
 0x581   :  { %v183_v3 = vsel %vm182_vm13, %v3245_v43, 8.0  ;;  %v2453_v9 = vrot.slane %v2437_v2, 6 }
 0x582   :  { %v184_v5 = vsel %vm141_vm4, %v183_v3, inf  ;;  %v2451_v3 = vrot.slane %v2436_v62, 7  ;;  %vm191_vm4 = vcmask 15360  }
 0x583   :  { %185 = vmin.xlane.f32.xlu0 %v184_v5  ;;  %v2567_v5 = vld [vmem:[%s4406_s2 + $0x13] sm:$0x1] }
 0x584   :  { %v2452_v10 = vsel %vm44_vm1, %v2451_v3, %v2435_v1  ;;  %v2583_v12 = vrot.slane %v2567_v5, 6  ;;  %vm189_vm1 = vcmask 7168  }
 0x585   :  { %v2454_v19 = vsel %vm218_vm6, %v2453_v9, %v2452_v10 }
 0x586   :  { %v2584_v25 = vsel %vm218_vm6, %v2583_v12, %v2582_v15 }
 0x5c4   :  { %v1617_v31 = vpop.f32.mrb[12].mxu1  ;;  %v1747_v32 = vpop.f32.mrb[10].mxu0 }
 0x5c5   :  { %v1628_v33 = vrot.slane %v1617_v31, %v3503_v30  ;;  %v1758_v34 = vrot.slane %v1747_v32, %v3503_v30  ;;  %v3011_v35 = vpop.f32.mrb[13].mxu1  ;;  %v3016_v36 = vpop.f32.mrb[11].mxu0  ;;  %v2457_v31 = vrot.slane %v2439_v17, 4  ;;  %v2456_v32 = vsel %vm221_vm7, %v2455_v18, %v2454_v19 }
 0x5c6   :  { %v2699_v35 = vld [vmem:[%s4406_s2 + $0x24] sm:$0x1]  ;;  %v2715_v36 = vrot.slane %v2698_v23, 5 }
 0x5c7   :  { %v1629_v37 = vcombine.high %v1628_v33, %v1628_v33  ;;  %v1636_v39 = vrot.slane %v1628_v33, %v3503_v30  ;;  %v1759_v40 = vcombine.high %v1758_v34, %v1758_v34  ;;  %v1766_v42 = vrot.slane %v1758_v34, %v3503_v30  ;;  %v2570_v33 = vld [vmem:[%s4406_s2 + $0x2b] sm:$0x1] }
 0x5c8   :  { %v1877_v41 = vpop.f32.mrb[14].mxu1  ;;  %v2007_v4 = vpop.f32.mrb[12].mxu0  ;;  %v2587_v34 = vrot.slane %v2569_v20, 4 }
 0x5c9   :  { %v1643_v44 = vrot.slane %v1629_v37, %v3503_v30  ;;  %1646 = vst.msk [vmem:[%s4410_s6 + $0xa] sm:$0x1] %vm335_vm15, %v1636_v39  ;;  %1648 = vst.msk [vmem:[%s4411_s7 + $0xa] sm:$0x1] %vm335_vm15, %v1636_v39  ;;  %v1773_v45 = vrot.slane %v1759_v40, %v3503_v30  ;;  %v1888_v46 = vrot.slane %v1877_v41, %v3503_v30  ;;  %v3021_v48 = vpop.f32.mrb[15].mxu1  ;;  %v3026_v49 = vpop.f32.mrb[13].mxu0 }
 0x5ca   :  { %1776 = vst.msk [vmem:[%s4410_s6 + $0xb] sm:$0x1] %vm335_vm15, %v1766_v42  ;;  %1778 = vst.msk [vmem:[%s4411_s7 + $0xb] sm:$0x1] %vm335_vm15, %v1766_v42  ;;  %v2018_v47 = vrot.slane %v2007_v4, %v3503_v30  ;;  %v2586_v37 = vsel %vm221_vm7, %v2585_v21, %v2584_v25  ;;  %v2714_v39 = vsel %vm218_vm6, %v2713_v24, %v2712_v26  ;;  %v2441_v40 = vld [vmem:[%s4406_s2 + $0x32] sm:$0x1] }
 0x5cb   :  { %1647 = vst.msk [vmem:[%s4410_s6 + $0x2a] sm:$0x1] %vm335_vm15, %v1643_v44  ;;  %1649 = vst.msk [vmem:[%s4411_s7 + $0x22] sm:$0x1] %vm335_vm15, %v1643_v44  ;;  %v1889_v50 = vcombine.high %v1888_v46, %v1888_v46  ;;  %v1896_v51 = vrot.slane %v1888_v46, %v3503_v30  ;;  %v2459_v42 = vrot.slane %v2440_v29, 3  ;;  %v2458_v41 = vsel %vm224_vm8, %v2457_v31, %v2456_v32 }
 0x5cc   :  { %1777 = vst.msk [vmem:[%s4410_s6 + $0x2b] sm:$0x1] %vm335_vm15, %v1773_v45  ;;  %1779 = vst.msk [vmem:[%s4411_s7 + $0x23] sm:$0x1] %vm335_vm15, %v1773_v45  ;;  %v2019_v52 = vcombine.high %v2018_v47, %v2018_v47  ;;  %v2026_v53 = vrot.slane %v2018_v47, %v3503_v30  ;;  %v2137_v54 = vpop.f32.mrb[16].mxu1  ;;  %v2589_v44 = vrot.slane %v2570_v33, 3  ;;  %v2588_v47 = vsel %vm224_vm8, %v2587_v34, %v2586_v37 }
 0x5cd   :  { %v1903_v55 = vrot.slane %v1889_v50, %v3503_v30  ;;  %1906 = vst.msk [vmem:[%s4410_s6 + $0xc] sm:$0x1] %vm335_vm15, %v1896_v51  ;;  %1908 = vst.msk [vmem:[%s4411_s7 + $0xc] sm:$0x1] %vm335_vm15, %v1896_v51  ;;  %v2148_v57 = vrot.slane %v2137_v54, %v3503_v30  ;;  %v3031_v58 = vpop.f32.mrb[17].mxu1  ;;  %v2717_v46 = vrot.slane %v2699_v35, 4  ;;  %v2716_v48 = vsel %vm221_vm7, %v2715_v36, %v2714_v39 }
 0x5ce   :  { %v2033_v56 = vrot.slane %v2019_v52, %v3503_v30  ;;  %2036 = vst.msk [vmem:[%s4410_s6 + $0xd] sm:$0x1] %vm335_vm15, %v2026_v53  ;;  %2038 = vst.msk [vmem:[%s4411_s7 + $0xd] sm:$0x1] %vm335_vm15, %v2026_v53  ;;  %v2571_v4 = vld [vmem:[%s4406_s2 + $0x33] sm:$0x1]  ;;  %v3065_v51 = vtrunc.f32 %v3689_v0  ;;  %v2460_v52 = vsel %vm227_vm9, %v2459_v42, %v2458_v41  ;;  %v3067_v58 = vtrunc.f32 %v3972_v38 }
 0x5cf   :  { %1907 = vst.msk [vmem:[%s4410_s6 + $0x2c] sm:$0x1] %vm335_vm15, %v1903_v55  ;;  %1909 = vst.msk [vmem:[%s4411_s7 + $0x24] sm:$0x1] %vm335_vm15, %v1903_v55  ;;  %v2149_v59 = vcombine.high %v2148_v57, %v2148_v57  ;;  %v2156_v60 = vrot.slane %v2148_v57, %v3503_v30  ;;  %v2700_v45 = vld [vmem:[%s4406_s2 + $0x2c] sm:$0x1]  ;;  %v3063_v57 = vtrunc.f32 %v3397_v22  ;;  %v2718_v0 = vsel %vm224_vm8, %v2717_v46, %v2716_v48 }
 0x5d0   :  { %2037 = vst.msk [vmem:[%s4410_s6 + $0x2d] sm:$0x1] %vm335_vm15, %v2033_v56  ;;  %2039 = vst.msk [vmem:[%s4411_s7 + $0x25] sm:$0x1] %vm335_vm15, %v2033_v56  ;;  %v2442_v49 = vld [vmem:[%s4406_s2 + $0x3a] sm:$0x1]  ;;  %v3066_v2 = vcvt.f32.s32 %v3065_v51  ;;  %v3068_v38 = vcvt.f32.s32 %v3067_v58 }
 0x5d1   :  { %v2163_v61 = vrot.slane %v2149_v59, %v3503_v30  ;;  %2166 = vst.msk [vmem:[%s4410_s6 + $0xe] sm:$0x1] %vm335_vm15, %v2156_v60  ;;  %2168 = vst.msk [vmem:[%s4411_s7 + $0xe] sm:$0x1] %vm335_vm15, %v2156_v60  ;;  %v2461_v50 = vrot.slane %v2441_v40, 2  ;;  %v2591_v54 = vrot.slane %v2571_v4, 2  ;;  %v2590_v59 = vsel %vm227_vm9, %v2589_v44, %v2588_v47 }
 0x5d2   :  { %v2572_v53 = vld [vmem:[%s4406_s2 + $0x3b] sm:$0x1]  ;;  %v2701_v55 = vld [vmem:[%s4406_s2 + $0x34] sm:$0x1]  ;;  %v2719_v56 = vrot.slane %v2700_v45, 3  ;;  %v2463_v60 = vrot.slane %v2442_v49, 1  ;;  %v3064_v5 = vcvt.f32.s32 %v3063_v57 }
 0x5d3   :  { %2167 = vst.msk [vmem:[%s4410_s6 + $0x2e] sm:$0x1] %vm335_vm15, %v2163_v61  ;;  %2169 = vst.msk [vmem:[%s4411_s7 + $0x26] sm:$0x1] %vm335_vm15, %v2163_v61  ;;  %v2462_v61 = vsel %vm230_vm10, %v2461_v50, %v2460_v52  ;;  %v2593_v62 = vrot.slane %v2572_v53, 1  ;;  %v2721_v1 = vrot.slane %v2701_v55, 2  ;;  %v2592_v3 = vsel %vm230_vm10, %v2591_v54, %v2590_v59 }
 0x5d4   :  { %v2720_v22 = vsel %vm227_vm9, %v2719_v56, %v2718_v0  ;;  %v2464_v27 = vsel %vm233_vm11, %v2463_v60, %v2462_v61  ;;  %vm193_vm7 = vcmask 23552   ;;  %v190_v12 = vsel %vm189_vm1, %v3064_v5, %v3066_v2  ;;  %s3154_s2 = smov [#allocation4]  }
 0x5d5   :  { %v2594_v10 = vsel %vm233_vm11, %v2593_v62, %v2592_v3  ;;  %v2722_v11 = vsel %vm230_vm10, %v2721_v1, %v2720_v22  ;;  %vm195_vm8 = vcmask 25600   ;;  %s2843_s30 = sshll.u32 %s3154_s2, 4  ;;  %s2844_s30 = int_to_ptr.vmem [resolvable:$true] %s2843_s30 }
 0x5d6   :  { %v2724_v14 = vsel %vm233_vm11, %v2723_v8, %v2722_v11  ;;  %s3080_s9 = scalar_lea.vmem %s2844_s30, 32  ;;  %p3085_p1 = scmp.lt.s32.totalorder %s2844_s30, %s2844_s30 }
 0x5d7   :  { %p3081_p0 = scmp.ne.s32.totalorder %s2844_s30, %s3080_s9  ;;  %p3086_p2 = scmp.lt.s32.totalorder %s3080_s9, %s3080_s9 }
 0x5d9   :  { %p3087_p3 = por %p3086_p2, %p3085_p1 }
 0x5db   :  { %p3088_p4 = pnand %p3087_p3, %p3081_p0 }
 0x610   :  { %v186_v6 = vpop.xlane.xlu0 %185 }
 0x611   :  { %vm187_vm6 = vcmp.eq.f32.partialorder %v3245_v43, %v186_v6  ;;  %v3069_v7 = vtrunc.f32 %v186_v6  ;;  %v192_v43 = vsel %vm191_vm4, %v190_v12, %v3068_v38 }
 0x612   :  { %v2895_v9 = vsel %vm187_vm6, 1.0, %v3152_v28 }
 0x613   :  { %v3070_v13 = vcvt.f32.s32 %v3069_v7  ;;  %3035 = vmatmul.mubr.msk.f32.vlgmr.msra.gmra.mrb[14].mxu0 %vm236_vm12, %v2895_v9  ;;  %3040 = vmatmul.mubr.msk.f32.vlgmr.msra.gmra.mrb[18].mxu1 %vm236_vm12, %v2895_v9 }
 0x614   :  { %3043 = vmatpush3.msra.mxu0 %v2464_v27  ;;  %3044 = vmatprep.mubr.msk.f32.mxu0 %vm3151_vm3, %v3152_v28 }
 0x615   :  { %3048 = vmatpush3.msra.mxu1 %v2594_v10  ;;  %3049 = vmatprep.mubr.msk.f32.mxu1 %vm3151_vm3, %v3152_v28  ;;  %v194_v15 = vsel %vm193_vm7, %v192_v43, %v3070_v13 }
 0x616   :  { %3052 = vmatprep.subr.mxu0 %v3152_v28  ;;  %196 = vst.msk [vmem:[#allocation6] sm:$0x3] %vm195_vm8, %v194_v15 }
 0x617   :  { %3045 = vmatmul.mubr.msk.f32.vlgmr.msra.gmra.mrb[16].mxu0 %vm236_vm12, %v2895_v9  ;;  %3050 = vmatmul.mubr.msk.f32.vlgmr.msra.gmra.mrb[20].mxu1 %vm236_vm12, %v2895_v9 }
 0x618   :  { %3053 = vmatpush3.msra.mxu0 %v2724_v14  ;;  %3054 = vmatprep.mubr.msk.f32.mxu0 %vm3151_vm3, %v3152_v28 }
 0x61b   :  { %3055 = vmatmul.mubr.msk.f32.vlgmr.msra.gmra.mrb[18].mxu0 %vm236_vm12, %v2895_v9 }
 0x61c   :  { %3091 = shalt.err (!%p3088_p4)
}
 0x61d   :  { %s3092_s12 = scalar_lea.hbm %s4408_s4, 32 }
 0x61e   :  { %p3093_p5 = scmp.ne.s32.totalorder %s4408_s4, %s3092_s12  ;;  %p3096_p6 = scmp.lt.u32.totalorder %s3092_s12, %s4408_s4 }
 0x620   :  { %p3098_p7 = pnand %p3096_p6, %p3093_p5 }
 0x622   :  { %3101 = shalt.err (!%p3098_p7)
}
 0x623   :  { %2846 = dma.vmem_to_hbm [thread:$0]  %s2844_s30, 32, %s4408_s4, [#allocation5]  }
 0x624   :  { %s3102_s18 = scalar_lea.vmem %s2834_s0, 32  ;;  %p3107_p9 = scmp.lt.s32.totalorder %s2834_s0, %s2834_s0 }
 0x625   :  { %p3103_p8 = scmp.ne.s32.totalorder %s2834_s0, %s3102_s18  ;;  %p3108_p10 = scmp.lt.s32.totalorder %s3102_s18, %s3102_s18 }
 0x627   :  { %p3109_p11 = por %p3108_p10, %p3107_p9 }
 0x629   :  { %p3110_p12 = pnand %p3109_p11, %p3103_p8 }
 0x62b   :  { %3113 = shalt.err (!%p3110_p12)
}
 0x62c   :  { %s3114_s21 = scalar_lea.hbm %s4407_s3, 32 }
 0x62d   :  { %p3115_p13 = scmp.ne.s32.totalorder %s4407_s3, %s3114_s21  ;;  %p3118_p0 = scmp.lt.u32.totalorder %s3114_s21, %s4407_s3 }
 0x62f   :  { %p3120_p1 = pnand %p3118_p0, %p3115_p13 }
 0x631   :  { %3123 = shalt.err (!%p3120_p1)
}
 0x632   :  { %2836 = dma.vmem_to_hbm [thread:$0]  %s2834_s0, 32, %s4407_s3, [#allocation3]  }
 0x633   :  { %s3156_s27 = smov [#allocation6]  }
 0x634   :  { %s2853_s28 = sshll.u32 %s3156_s27, 4  ;;  %s2854_s28 = int_to_ptr.vmem [resolvable:$true] %s2853_s28 }
 0x635   :  { %s3124_s29 = scalar_lea.vmem %s2854_s28, 32  ;;  %p3129_p3 = scmp.lt.s32.totalorder %s2854_s28, %s2854_s28 }
 0x636   :  { %p3125_p2 = scmp.ne.s32.totalorder %s2854_s28, %s3124_s29  ;;  %p3130_p4 = scmp.lt.s32.totalorder %s3124_s29, %s3124_s29 }
 0x638   :  { %p3131_p5 = por %p3130_p4, %p3129_p3 }
 0x63a   :  { %p3132_p6 = pnand %p3131_p5, %p3125_p2 }
 0x63c   :  { %3135 = shalt.err (!%p3132_p6)
}
 0x63d   :  { %s3136_s8 = scalar_lea.hbm %s4409_s5, 32 }
 0x63e   :  { %p3137_p7 = scmp.ne.s32.totalorder %s4409_s5, %s3136_s8  ;;  %p3140_p8 = scmp.lt.u32.totalorder %s3136_s8, %s4409_s5 }
 0x640   :  { %p3142_p9 = pnand %p3140_p8, %p3137_p7 }
 0x642   :  { %3145 = shalt.err (!%p3142_p9)
}
 0x643   :  { %2856 = dma.vmem_to_hbm [thread:$0]  %s2854_s28, 32, %s4409_s5, [#allocation5]  }
 0x6e6   :  { %v2272_v28 = vpop.f32.mrb[14].mxu0  ;;  %v2402_v16 = vpop.f32.mrb[18].mxu1 }
 0x6e7   :  { %v2283_v17 = vrot.slane %v2272_v28, %v3503_v30  ;;  %v2413_v18 = vrot.slane %v2402_v16, %v3503_v30  ;;  %v3036_v19 = vpop.f32.mrb[15].mxu0  ;;  %v3041_v20 = vpop.f32.mrb[19].mxu1 }
 0x6e9   :  { %v2284_v21 = vcombine.high %v2283_v17, %v2283_v17  ;;  %v2291_v23 = vrot.slane %v2283_v17, %v3503_v30  ;;  %v2414_v24 = vcombine.high %v2413_v18, %v2413_v18  ;;  %v2421_v25 = vrot.slane %v2413_v18, %v3503_v30 }
 0x6ea   :  { %v2532_v26 = vpop.f32.mrb[16].mxu0  ;;  %v2662_v29 = vpop.f32.mrb[20].mxu1 }
 0x6eb   :  { %v2298_v31 = vrot.slane %v2284_v21, %v3503_v30  ;;  %2301 = vst.msk [vmem:[%s4410_s6 + $0xf] sm:$0x1] %vm335_vm15, %v2291_v23  ;;  %2303 = vst.msk [vmem:[%s4411_s7 + $0xf] sm:$0x1] %vm335_vm15, %v2291_v23  ;;  %v2428_v32 = vrot.slane %v2414_v24, %v3503_v30  ;;  %v2543_v33 = vrot.slane %v2532_v26, %v3503_v30  ;;  %v3046_v35 = vpop.f32.mrb[17].mxu0  ;;  %v3051_v36 = vpop.f32.mrb[21].mxu1 }
 0x6ec   :  { %2431 = vst.msk [vmem:[%s4410_s6 + $0x10] sm:$0x1] %vm335_vm15, %v2421_v25  ;;  %2433 = vst.msk [vmem:[%s4411_s7 + $0x10] sm:$0x1] %vm335_vm15, %v2421_v25  ;;  %v2673_v34 = vrot.slane %v2662_v29, %v3503_v30 }
 0x6ed   :  { %2302 = vst.msk [vmem:[%s4410_s6 + $0x2f] sm:$0x1] %vm335_vm15, %v2298_v31  ;;  %2304 = vst.msk [vmem:[%s4411_s7 + $0x27] sm:$0x1] %vm335_vm15, %v2298_v31  ;;  %v2544_v37 = vcombine.high %v2543_v33, %v2543_v33  ;;  %v2551_v39 = vrot.slane %v2543_v33, %v3503_v30 }
 0x6ee   :  { %2432 = vst.msk [vmem:[%s4410_s6 + $0x30] sm:$0x1] %vm335_vm15, %v2428_v32  ;;  %2434 = vst.msk [vmem:[%s4411_s7 + $0x28] sm:$0x1] %vm335_vm15, %v2428_v32  ;;  %v2674_v40 = vcombine.high %v2673_v34, %v2673_v34  ;;  %v2681_v42 = vrot.slane %v2673_v34, %v3503_v30  ;;  %v2792_v41 = vpop.f32.mrb[18].mxu0 }
 0x6ef   :  { %v2558_v4 = vrot.slane %v2544_v37, %v3503_v30  ;;  %2561 = vst.msk [vmem:[%s4410_s6 + $0x11] sm:$0x1] %vm335_vm15, %v2551_v39  ;;  %2563 = vst.msk [vmem:[%s4411_s7 + $0x11] sm:$0x1] %vm335_vm15, %v2551_v39  ;;  %v2803_v45 = vrot.slane %v2792_v41, %v3503_v30  ;;  %v3056_v46 = vpop.f32.mrb[19].mxu0 }
 0x6f0   :  { %v2688_v44 = vrot.slane %v2674_v40, %v3503_v30  ;;  %2691 = vst.msk [vmem:[%s4410_s6 + $0x12] sm:$0x1] %vm335_vm15, %v2681_v42  ;;  %2693 = vst.msk [vmem:[%s4411_s7 + $0x12] sm:$0x1] %vm335_vm15, %v2681_v42 }
 0x6f1   :  { %2562 = vst.msk [vmem:[%s4410_s6 + $0x31] sm:$0x1] %vm335_vm15, %v2558_v4  ;;  %2564 = vst.msk [vmem:[%s4411_s7 + $0x29] sm:$0x1] %vm335_vm15, %v2558_v4  ;;  %v2804_v47 = vcombine.high %v2803_v45, %v2803_v45  ;;  %v2811_v48 = vrot.slane %v2803_v45, %v3503_v30 }
 0x6f2   :  { %2692 = vst.msk [vmem:[%s4410_s6 + $0x32] sm:$0x1] %vm335_vm15, %v2688_v44  ;;  %2694 = vst.msk [vmem:[%s4411_s7 + $0x2a] sm:$0x1] %vm335_vm15, %v2688_v44 }
 0x6f3   :  { %v2818_v49 = vrot.slane %v2804_v47, %v3503_v30  ;;  %2821 = vst.msk [vmem:[%s4410_s6 + $0x13] sm:$0x1] %vm335_vm15, %v2811_v48  ;;  %2823 = vst.msk [vmem:[%s4411_s7 + $0x13] sm:$0x1] %vm335_vm15, %v2811_v48 }
 0x6f5   :  { %2822 = vst.msk [vmem:[%s4410_s6 + $0x33] sm:$0x1] %vm335_vm15, %v2818_v49  ;;  %2824 = vst.msk [vmem:[%s4411_s7 + $0x2b] sm:$0x1] %vm335_vm15, %v2818_v49 }
 0x6f6   :  { %3146 = dma.done.wait [#allocation3], 32  }
 0x6f7   :  { %3147 = vsyncadd [#allocation3], 4294967264 }
 0x6f8   :  { %3148 = dma.done.wait [#allocation5], 64  }
 0x6f9   :  { %3149 = vsyncadd [#allocation5], 4294967232 }
 0x6fa   :  { %2874 = vsyncpa [#allocation3], 1 }
 0x6fb   :  { %2875 = vsyncpa [#allocation5], 1 }

</bundles_post_ra>
